<compile_context>
chip_gen: v7x
topology: tpu7x:2x2x1
jax: 0.10.0
libtpu: 0.0.40
codegen_flags: <defaults>
</compile_context>

<pallas_src>
import numpy as np
import jax
import jax.numpy as jnp
from jax import lax
from jax.experimental import pallas as pl
from jax.experimental.pallas import tpu as pltpu

N_WIRES = 4
DIM = 2 ** N_WIRES          # 16 amplitudes
PDIM = 2 * DIM              # 32 packed rows (Re | Im)

# Deterministic "trainable" parameter init (synthetic, no checkpoint load).
RX0_THETA = 0.3
RY0_THETA = -0.7
RZ0_THETA = 1.1
CRX0_THETA = 0.5

GATE_TYPES = ["rx"] * 4 + ["ry"] * 4 + ["rz"] * 4 + ["rx"] * 4  # encoder gates


# ---------------------------------------------------------------------------
# Constant construction (plain numpy glue: parameter setup, no per-batch data)
# ---------------------------------------------------------------------------
def embed_gate(G, wires, n=N_WIRES):
    """Embed a 2^m x 2^m gate on `wires` (wire 0 = most-significant bit) into 2^n."""
    dim = 2 ** n
    m = len(wires)
    U = np.zeros((dim, dim), dtype=np.complex128)
    for col in range(dim):
        bits = [(col >> (n - 1 - w)) & 1 for w in range(n)]
        g_in = 0
        for w in wires:
            g_in = (g_in << 1) | bits[w]
        for g_out in range(2 ** m):
            nb = list(bits)
            for idx, w in enumerate(wires):
                nb[w] = (g_out >> (m - 1 - idx)) & 1
            row = 0
            for w in range(n):
                row = (row << 1) | nb[w]
            U[row, col] += G[g_out, g_in]
    return U


def _rx(t):
    c, s = np.cos(t / 2), np.sin(t / 2)
    return np.array([[c, -1j * s], [-1j * s, c]], dtype=np.complex128)


def _ry(t):
    c, s = np.cos(t / 2), np.sin(t / 2)
    return np.array([[c, -s], [s, c]], dtype=np.complex128)


def _rz(t):
    return np.array([[np.exp(-1j * t / 2), 0], [0, np.exp(1j * t / 2)]],
                    dtype=np.complex128)


def _crx(t):
    M = np.eye(4, dtype=np.complex128)
    M[2:, 2:] = _rx(t)
    return M


def build_fixed_unitary():
    H = np.array([[1, 1], [1, -1]], dtype=np.complex128) / np.sqrt(2.0)
    SX = 0.5 * np.array([[1 + 1j, 1 - 1j], [1 - 1j, 1 + 1j]], dtype=np.complex128)
    CNOT = np.array([[1, 0, 0, 0], [0, 1, 0, 0], [0, 0, 0, 1], [0, 0, 1, 0]],
                    dtype=np.complex128)
    QU = np.array([[1, 0, 0, 0], [0, 1, 0, 0], [0, 0, 0, 1j], [0, 0, -1j, 0]],
                  dtype=np.complex128)
    seq = [
        (_rx(RX0_THETA), [0]),
        (_ry(RY0_THETA), [1]),
        (_rz(RZ0_THETA), [3]),
        (_crx(CRX0_THETA), [0, 2]),
        (H, [3]),
        (SX, [2]),
        (CNOT, [3, 0]),
        (QU, [1, 2]),
    ]
    U = np.eye(DIM, dtype=np.complex128)
    for G, wires in seq:
        U = embed_gate(G, wires) @ U
    return U


def build_constants():
    # Signed permutation matrices folding bit-flip + re/im mixing + sign into a
    # single left-multiply (partner = A @ state) for rx (APERM[w]) and
    # ry (APERM[4+w]); per-row sign factors for rz (half-swap partner).
    APERM = np.zeros((2 * N_WIRES, PDIM, PDIM), dtype=np.float32)
    SGN_RZ = np.zeros((PDIM, N_WIRES), dtype=np.float32)
    for w in range(N_WIRES):
        v = 1 << (N_WIRES - 1 - w)
        for r in range(PDIM):
            i = r & (DIM - 1)
            sgn = 1.0 if ((i >> (N_WIRES - 1 - w)) & 1) else -1.0
            # rx: new[r] = c*old[r] + s*(+1 re / -1 im)*old[(r^v)^16]
            APERM[w, r, (r ^ v) ^ DIM] = 1.0 if r < DIM else -1.0
            # ry: new[r] = c*old[r] + s*sgn*old[r^v]
            APERM[N_WIRES + w, r, r ^ v] = sgn
            # rz: new[r] = c*old[r] + s*f*old[r^16]; f = -sgn (Re half), +sgn (Im half)
            SGN_RZ[r, w] = -sgn if r < DIM else sgn

    # Batch-independent tail circuit folded into one packed 32x32 real matrix.
    U_fixed = build_fixed_unitary()
    Ur = U_fixed.real.astype(np.float32)
    Ui = U_fixed.imag.astype(np.float32)
    U32 = np.block([[Ur, -Ui], [Ui, Ur]]).astype(np.float32)        # (32, 32)

    # Folded measurement: |psi|^2 (16) -> PauliZ expvals (4) -> pair-sum (2)
    # -> nearest upsample x8 (16), in column-vector (left-multiply) form,
    # applied directly to the squared packed state (Re^2 + Im^2 folded in).
    Z = np.zeros((DIM, N_WIRES), dtype=np.float64)
    for i in range(DIM):
        for w in range(N_WIRES):
            Z[i, w] = 1.0 - 2.0 * ((i >> (N_WIRES - 1 - w)) & 1)
    PS = np.array([[1, 0], [1, 0], [0, 1], [0, 1]], dtype=np.float64)
    R = np.zeros((2, DIM), dtype=np.float64)
    for t in range(DIM):
        R[t // 8, t] = 1.0
    M_left = (Z @ PS @ R).T.astype(np.float32)                      # (16, 16)
    M32 = np.concatenate([M_left, M_left], axis=1)                  # (16, 32)

    consts = (jnp.asarray(APERM), jnp.asarray(SGN_RZ),
              jnp.asarray(U32), jnp.asarray(M32))
    return consts, U_fixed, Z, PS, R


# ---------------------------------------------------------------------------
# Pallas kernel
# ---------------------------------------------------------------------------
def qfc_kernel(x_ref, inj_ref, aperm_ref, sgnrz_ref, u32_ref, m32_ref, o_ref):
    ang = x_ref[...] + inj_ref[...]                     # (16, B): angles, batch on lanes
    # Hoisted transcendentals: 2 full-width EUP calls instead of 32 (B,1) calls.
    c_all = jnp.cos(ang * 0.5)
    s_all = jnp.sin(ang * 0.5)

    b = ang.shape[1]
    rows = lax.broadcasted_iota(jnp.int32, (PDIM, b), 0)
    state = jnp.where(rows == 0, 1.0, 0.0).astype(jnp.float32)      # |0000> per column

    # Encoder: 16 batch-dependent rotations (statically unrolled).
    for k, gate in enumerate(GATE_TYPES):
        w = k % N_WIRES
        c = c_all[k:k + 1, :]                           # (1, B), sublane-broadcast
        s = s_all[k:k + 1, :]
        if gate == "rz":
            # partner[r] = (+/- sign_w) * state[r ^ 16]: tile-aligned half swap, no MXU.
            swapped = jnp.concatenate([state[DIM:, :], state[:DIM, :]], axis=0)
            partner = sgnrz_ref[:, w:w + 1] * swapped
        else:
            idx = w if gate == "rx" else N_WIRES + w
            partner = jnp.dot(aperm_ref[idx], state,
                              preferred_element_type=jnp.float32)
        state = c * state + s * partner

    # Batch-independent tail circuit folded into one packed 32x32 real matmul.
    state = jnp.dot(u32_ref[...], state, preferred_element_type=jnp.float32)

    # MeasureAll(PauliZ) + pair-sum + 8x nearest upsample folded into one matmul
    # on the squared packed state. Output block (16, B_TILE) is lane-dense.
    o_ref[...] = jnp.dot(m32_ref[...], state * state,
                         preferred_element_type=jnp.float32)


def qfc_model2_forward(x, injection, consts, *, b_tile=128):
    bsz = x.shape[0]
    xf = x.reshape(bsz, DIM).astype(jnp.float32)        # x.view(bsz, 16)
    injf = injection.reshape(bsz, DIM).astype(jnp.float32)
    # Transpose so batch lands on the lane axis; pad batch to a tile multiple.
    x_t, inj_t = xf.T, injf.T                           # (16, B)
    n_tiles = pl.cdiv(bsz, b_tile)
    bp = n_tiles * b_tile
    if bp != bsz:
        pad = ((0, 0), (0, bp - bsz))
        x_t = jnp.pad(x_t, pad)
        inj_t = jnp.pad(inj_t, pad)

    aperm, sgn_rz, u32, m32 = consts

    def const_spec(shape):
        return pl.BlockSpec(shape, lambda i: (0,) * len(shape))

    out_t = pl.pallas_call(
        qfc_kernel,
        out_shape=jax.ShapeDtypeStruct((DIM, bp), jnp.float32),
        grid=(n_tiles,),
        in_specs=[
            pl.BlockSpec((DIM, b_tile), lambda i: (0, i)),   # x (angles)
            pl.BlockSpec((DIM, b_tile), lambda i: (0, i)),   # injection
            const_spec(aperm.shape),                         # signed permutations
            const_spec(sgn_rz.shape),                        # rz row signs
            const_spec(u32.shape),                           # packed tail unitary
            const_spec(m32.shape),                           # folded measurement
        ],
        out_specs=pl.BlockSpec((DIM, b_tile), lambda i: (0, i)),
        compiler_params=pltpu.CompilerParams(
            dimension_semantics=("parallel",)),
    )(x_t, inj_t, aperm, sgn_rz, u32, m32)

    out = out_t[:, :bsz].T                               # (bsz, 16)
    # matches: measure -> (bsz,2,2).sum(-1).squeeze() -> reshape(bsz,1,-1) -> Upsample(8)
    # NOTE: squeeze() only drops dims for bsz==1; this script uses bsz>1.
    return out.reshape(bsz, 1, DIM)


# ---------------------------------------------------------------------------
# Pure numpy reference (independent full-matrix simulation) for verification.
# ---------------------------------------------------------------------------
def reference_forward(x, injection, U_fixed, Z, PS, R):
    bsz = x.shape[0]
    ang = (np.asarray(x, np.float64) + np.asarray(injection, np.float64)).reshape(bsz, DIM)
    state = np.zeros((bsz, DIM), dtype=np.complex128)
    state[:, 0] = 1.0
    for k, gate in enumerate(GATE_TYPES):
        w = k % N_WIRES
        for b in range(bsz):
            t = ang[b, k]
            if gate == "rx":
                G = _rx(t)
            elif gate == "ry":
                G = _ry(t)
            else:
                G = _rz(t)
            state[b] = embed_gate(G, [w]) @ state[b]
    state = state @ U_fixed.T
    prob = np.abs(state) ** 2
    meas = prob @ Z                                   # (bsz, 4)
    pair = meas.reshape(bsz, 2, 2).sum(-1)            # (bsz, 2)
    out = (pair @ R).reshape(bsz, 1, DIM)             # nearest upsample x8
    return out


if __name__ == "__main__":
    key = jax.random.PRNGKey(0)
    k1, k2 = jax.random.split(key)
    # Small shapes implied by forward: x.view(bsz, 16) -> (B, 1, 4, 4) NCHW.
    x = jax.random.normal(k1, (2, 1, 4, 4), dtype=jnp.float32) * 0.7
    injection = jax.random.normal(k2, (2, 1, 4, 4), dtype=jnp.float32) * 0.3

    consts, U_fixed, Z, PS, R = build_constants()

    out = qfc_model2_forward(x, injection, consts)
    out = jax.block_until_ready(out)

    ref = reference_forward(np.asarray(x), np.asarray(injection), U_fixed, Z, PS, R)
    np.testing.assert_allclose(np.asarray(out), ref, rtol=1e-4, atol=1e-4)
    assert out.shape == (2, 1, 16)

    print("KERNEL_OK")
</pallas_src>

<mosaic_0001>
module attributes {stable_mosaic.version = 11 : i64} {
  func.func @qfc_kernel(%arg0: i32, %arg1: memref<16x128xf32, #tpu.memory_space<vmem>>, %arg2: memref<16x128xf32, #tpu.memory_space<vmem>>, %arg3: memref<8x32x32xf32, #tpu.memory_space<vmem>>, %arg4: memref<32x4xf32, #tpu.memory_space<vmem>>, %arg5: memref<32x32xf32, #tpu.memory_space<vmem>>, %arg6: memref<16x32xf32, #tpu.memory_space<vmem>>, %arg7: memref<16x128xf32, #tpu.memory_space<vmem>>) attributes {dimension_semantics = [#tpu.dimension_semantics<parallel>], iteration_bounds = array<i64: 1>, scalar_prefetch = 0 : i64, scratch_operands = 0 : i64, tpu.core_type = #tpu.core_type<tc>, window_params = [{transform_indices = @transform_0, window_bounds = array<i64: 16, 128>}, {transform_indices = @transform_1, window_bounds = array<i64: 16, 128>}, {pipeline_mode = #tpu.pipeline_mode<synchronous>, transform_indices = @transform_2, window_bounds = array<i64: 8, 32, 32>}, {pipeline_mode = #tpu.pipeline_mode<synchronous>, transform_indices = @transform_3, window_bounds = array<i64: 32, 4>}, {pipeline_mode = #tpu.pipeline_mode<synchronous>, transform_indices = @transform_4, window_bounds = array<i64: 32, 32>}, {pipeline_mode = #tpu.pipeline_mode<synchronous>, transform_indices = @transform_5, window_bounds = array<i64: 16, 32>}, {transform_indices = @transform_6, window_bounds = array<i64: 16, 128>}]} {
    %c0 = arith.constant 0 : index
    %c0_0 = arith.constant 0 : index
    %0 = vector.load %arg1[%c0, %c0_0] : memref<16x128xf32, #tpu.memory_space<vmem>>, vector<16x128xf32>
    %c0_1 = arith.constant 0 : index
    %c0_2 = arith.constant 0 : index
    %1 = vector.load %arg2[%c0_1, %c0_2] : memref<16x128xf32, #tpu.memory_space<vmem>>, vector<16x128xf32>
    %2 = arith.addf %0, %1 : vector<16x128xf32>
    %cst = arith.constant 5.000000e-01 : f32
    %3 = vector.broadcast %cst : f32 to vector<16x128xf32>
    %4 = arith.mulf %2, %3 : vector<16x128xf32>
    %5 = math.cos %4 : vector<16x128xf32>
    %cst_3 = arith.constant 5.000000e-01 : f32
    %6 = vector.broadcast %cst_3 : f32 to vector<16x128xf32>
    %7 = arith.mulf %2, %6 : vector<16x128xf32>
    %8 = math.sin %7 : vector<16x128xf32>
    %9 = tpu.iota {dimensions = array<i32: 0>} : vector<32x128xi32>
    %c0_i32 = arith.constant 0 : i32
    %10 = vector.broadcast %c0_i32 : i32 to vector<32x128xi32>
    %11 = arith.cmpi eq, %9, %10 : vector<32x128xi32>
    %cst_4 = arith.constant 1.000000e+00 : f32
    %cst_5 = arith.constant 0.000000e+00 : f32
    %12 = vector.broadcast %cst_4 : f32 to vector<32x128xf32>
    %13 = vector.broadcast %cst_5 : f32 to vector<32x128xf32>
    %14 = arith.select %11, %12, %13 : vector<32x128xi1>, vector<32x128xf32>
    %15 = vector.extract_strided_slice %5 {offsets = [0, 0], sizes = [1, 128], strides = [1, 1]} : vector<16x128xf32> to vector<1x128xf32>
    %16 = vector.extract_strided_slice %8 {offsets = [0, 0], sizes = [1, 128], strides = [1, 1]} : vector<16x128xf32> to vector<1x128xf32>
    %c0_6 = arith.constant 0 : index
    %c0_7 = arith.constant 0 : index
    %c0_8 = arith.constant 0 : index
    %17 = vector.load %arg3[%c0_6, %c0_7, %c0_8] : memref<8x32x32xf32, #tpu.memory_space<vmem>>, vector<1x32x32xf32>
    %18 = vector.shape_cast %17 : vector<1x32x32xf32> to vector<32x32xf32>
    %cst_9 = arith.constant dense<0.000000e+00> : vector<32x128xf32>
    %19 = tpu.matmul %18, %14, %cst_9 {dimension_numbers = #tpu.dot_dimension_numbers<[1], [0], [0], [1], [0, 0, 1, 1], [], []>} : vector<32x32xf32>, vector<32x128xf32>, vector<32x128xf32> -> vector<32x128xf32>
    %20 = vector.broadcast %15 : vector<1x128xf32> to vector<32x128xf32>
    %21 = arith.mulf %20, %14 : vector<32x128xf32>
    %22 = vector.broadcast %16 : vector<1x128xf32> to vector<32x128xf32>
    %23 = arith.mulf %22, %19 : vector<32x128xf32>
    %24 = arith.addf %21, %23 : vector<32x128xf32>
    %25 = vector.extract_strided_slice %5 {offsets = [1, 0], sizes = [1, 128], strides = [1, 1]} : vector<16x128xf32> to vector<1x128xf32>
    %26 = vector.extract_strided_slice %8 {offsets = [1, 0], sizes = [1, 128], strides = [1, 1]} : vector<16x128xf32> to vector<1x128xf32>
    %c1 = arith.constant 1 : index
    %c0_10 = arith.constant 0 : index
    %c0_11 = arith.constant 0 : index
    %27 = vector.load %arg3[%c1, %c0_10, %c0_11] : memref<8x32x32xf32, #tpu.memory_space<vmem>>, vector<1x32x32xf32>
    %28 = vector.shape_cast %27 : vector<1x32x32xf32> to vector<32x32xf32>
    %cst_12 = arith.constant dense<0.000000e+00> : vector<32x128xf32>
    %29 = tpu.matmul %28, %24, %cst_12 {dimension_numbers = #tpu.dot_dimension_numbers<[1], [0], [0], [1], [0, 0, 1, 1], [], []>} : vector<32x32xf32>, vector<32x128xf32>, vector<32x128xf32> -> vector<32x128xf32>
    %30 = vector.broadcast %25 : vector<1x128xf32> to vector<32x128xf32>
    %31 = arith.mulf %30, %24 : vector<32x128xf32>
    %32 = vector.broadcast %26 : vector<1x128xf32> to vector<32x128xf32>
    %33 = arith.mulf %32, %29 : vector<32x128xf32>
    %34 = arith.addf %31, %33 : vector<32x128xf32>
    %35 = vector.extract_strided_slice %5 {offsets = [2, 0], sizes = [1, 128], strides = [1, 1]} : vector<16x128xf32> to vector<1x128xf32>
    %36 = vector.extract_strided_slice %8 {offsets = [2, 0], sizes = [1, 128], strides = [1, 1]} : vector<16x128xf32> to vector<1x128xf32>
    %c2 = arith.constant 2 : index
    %c0_13 = arith.constant 0 : index
    %c0_14 = arith.constant 0 : index
    %37 = vector.load %arg3[%c2, %c0_13, %c0_14] : memref<8x32x32xf32, #tpu.memory_space<vmem>>, vector<1x32x32xf32>
    %38 = vector.shape_cast %37 : vector<1x32x32xf32> to vector<32x32xf32>
    %cst_15 = arith.constant dense<0.000000e+00> : vector<32x128xf32>
    %39 = tpu.matmul %38, %34, %cst_15 {dimension_numbers = #tpu.dot_dimension_numbers<[1], [0], [0], [1], [0, 0, 1, 1], [], []>} : vector<32x32xf32>, vector<32x128xf32>, vector<32x128xf32> -> vector<32x128xf32>
    %40 = vector.broadcast %35 : vector<1x128xf32> to vector<32x128xf32>
    %41 = arith.mulf %40, %34 : vector<32x128xf32>
    %42 = vector.broadcast %36 : vector<1x128xf32> to vector<32x128xf32>
    %43 = arith.mulf %42, %39 : vector<32x128xf32>
    %44 = arith.addf %41, %43 : vector<32x128xf32>
    %45 = vector.extract_strided_slice %5 {offsets = [3, 0], sizes = [1, 128], strides = [1, 1]} : vector<16x128xf32> to vector<1x128xf32>
    %46 = vector.extract_strided_slice %8 {offsets = [3, 0], sizes = [1, 128], strides = [1, 1]} : vector<16x128xf32> to vector<1x128xf32>
    %c3 = arith.constant 3 : index
    %c0_16 = arith.constant 0 : index
    %c0_17 = arith.constant 0 : index
    %47 = vector.load %arg3[%c3, %c0_16, %c0_17] : memref<8x32x32xf32, #tpu.memory_space<vmem>>, vector<1x32x32xf32>
    %48 = vector.shape_cast %47 : vector<1x32x32xf32> to vector<32x32xf32>
    %cst_18 = arith.constant dense<0.000000e+00> : vector<32x128xf32>
    %49 = tpu.matmul %48, %44, %cst_18 {dimension_numbers = #tpu.dot_dimension_numbers<[1], [0], [0], [1], [0, 0, 1, 1], [], []>} : vector<32x32xf32>, vector<32x128xf32>, vector<32x128xf32> -> vector<32x128xf32>
    %50 = vector.broadcast %45 : vector<1x128xf32> to vector<32x128xf32>
    %51 = arith.mulf %50, %44 : vector<32x128xf32>
    %52 = vector.broadcast %46 : vector<1x128xf32> to vector<32x128xf32>
    %53 = arith.mulf %52, %49 : vector<32x128xf32>
    %54 = arith.addf %51, %53 : vector<32x128xf32>
    %55 = vector.extract_strided_slice %5 {offsets = [4, 0], sizes = [1, 128], strides = [1, 1]} : vector<16x128xf32> to vector<1x128xf32>
    %56 = vector.extract_strided_slice %8 {offsets = [4, 0], sizes = [1, 128], strides = [1, 1]} : vector<16x128xf32> to vector<1x128xf32>
    %c4 = arith.constant 4 : index
    %c0_19 = arith.constant 0 : index
    %c0_20 = arith.constant 0 : index
    %57 = vector.load %arg3[%c4, %c0_19, %c0_20] : memref<8x32x32xf32, #tpu.memory_space<vmem>>, vector<1x32x32xf32>
    %58 = vector.shape_cast %57 : vector<1x32x32xf32> to vector<32x32xf32>
    %cst_21 = arith.constant dense<0.000000e+00> : vector<32x128xf32>
    %59 = tpu.matmul %58, %54, %cst_21 {dimension_numbers = #tpu.dot_dimension_numbers<[1], [0], [0], [1], [0, 0, 1, 1], [], []>} : vector<32x32xf32>, vector<32x128xf32>, vector<32x128xf32> -> vector<32x128xf32>
    %60 = vector.broadcast %55 : vector<1x128xf32> to vector<32x128xf32>
    %61 = arith.mulf %60, %54 : vector<32x128xf32>
    %62 = vector.broadcast %56 : vector<1x128xf32> to vector<32x128xf32>
    %63 = arith.mulf %62, %59 : vector<32x128xf32>
    %64 = arith.addf %61, %63 : vector<32x128xf32>
    %65 = vector.extract_strided_slice %5 {offsets = [5, 0], sizes = [1, 128], strides = [1, 1]} : vector<16x128xf32> to vector<1x128xf32>
    %66 = vector.extract_strided_slice %8 {offsets = [5, 0], sizes = [1, 128], strides = [1, 1]} : vector<16x128xf32> to vector<1x128xf32>
    %c5 = arith.constant 5 : index
    %c0_22 = arith.constant 0 : index
    %c0_23 = arith.constant 0 : index
    %67 = vector.load %arg3[%c5, %c0_22, %c0_23] : memref<8x32x32xf32, #tpu.memory_space<vmem>>, vector<1x32x32xf32>
    %68 = vector.shape_cast %67 : vector<1x32x32xf32> to vector<32x32xf32>
    %cst_24 = arith.constant dense<0.000000e+00> : vector<32x128xf32>
    %69 = tpu.matmul %68, %64, %cst_24 {dimension_numbers = #tpu.dot_dimension_numbers<[1], [0], [0], [1], [0, 0, 1, 1], [], []>} : vector<32x32xf32>, vector<32x128xf32>, vector<32x128xf32> -> vector<32x128xf32>
    %70 = vector.broadcast %65 : vector<1x128xf32> to vector<32x128xf32>
    %71 = arith.mulf %70, %64 : vector<32x128xf32>
    %72 = vector.broadcast %66 : vector<1x128xf32> to vector<32x128xf32>
    %73 = arith.mulf %72, %69 : vector<32x128xf32>
    %74 = arith.addf %71, %73 : vector<32x128xf32>
    %75 = vector.extract_strided_slice %5 {offsets = [6, 0], sizes = [1, 128], strides = [1, 1]} : vector<16x128xf32> to vector<1x128xf32>
    %76 = vector.extract_strided_slice %8 {offsets = [6, 0], sizes = [1, 128], strides = [1, 1]} : vector<16x128xf32> to vector<1x128xf32>
    %c6 = arith.constant 6 : index
    %c0_25 = arith.constant 0 : index
    %c0_26 = arith.constant 0 : index
    %77 = vector.load %arg3[%c6, %c0_25, %c0_26] : memref<8x32x32xf32, #tpu.memory_space<vmem>>, vector<1x32x32xf32>
    %78 = vector.shape_cast %77 : vector<1x32x32xf32> to vector<32x32xf32>
    %cst_27 = arith.constant dense<0.000000e+00> : vector<32x128xf32>
    %79 = tpu.matmul %78, %74, %cst_27 {dimension_numbers = #tpu.dot_dimension_numbers<[1], [0], [0], [1], [0, 0, 1, 1], [], []>} : vector<32x32xf32>, vector<32x128xf32>, vector<32x128xf32> -> vector<32x128xf32>
    %80 = vector.broadcast %75 : vector<1x128xf32> to vector<32x128xf32>
    %81 = arith.mulf %80, %74 : vector<32x128xf32>
    %82 = vector.broadcast %76 : vector<1x128xf32> to vector<32x128xf32>
    %83 = arith.mulf %82, %79 : vector<32x128xf32>
    %84 = arith.addf %81, %83 : vector<32x128xf32>
    %85 = vector.extract_strided_slice %5 {offsets = [7, 0], sizes = [1, 128], strides = [1, 1]} : vector<16x128xf32> to vector<1x128xf32>
    %86 = vector.extract_strided_slice %8 {offsets = [7, 0], sizes = [1, 128], strides = [1, 1]} : vector<16x128xf32> to vector<1x128xf32>
    %c7 = arith.constant 7 : index
    %c0_28 = arith.constant 0 : index
    %c0_29 = arith.constant 0 : index
    %87 = vector.load %arg3[%c7, %c0_28, %c0_29] : memref<8x32x32xf32, #tpu.memory_space<vmem>>, vector<1x32x32xf32>
    %88 = vector.shape_cast %87 : vector<1x32x32xf32> to vector<32x32xf32>
    %cst_30 = arith.constant dense<0.000000e+00> : vector<32x128xf32>
    %89 = tpu.matmul %88, %84, %cst_30 {dimension_numbers = #tpu.dot_dimension_numbers<[1], [0], [0], [1], [0, 0, 1, 1], [], []>} : vector<32x32xf32>, vector<32x128xf32>, vector<32x128xf32> -> vector<32x128xf32>
    %90 = vector.broadcast %85 : vector<1x128xf32> to vector<32x128xf32>
    %91 = arith.mulf %90, %84 : vector<32x128xf32>
    %92 = vector.broadcast %86 : vector<1x128xf32> to vector<32x128xf32>
    %93 = arith.mulf %92, %89 : vector<32x128xf32>
    %94 = arith.addf %91, %93 : vector<32x128xf32>
    %95 = vector.extract_strided_slice %5 {offsets = [8, 0], sizes = [1, 128], strides = [1, 1]} : vector<16x128xf32> to vector<1x128xf32>
    %96 = vector.extract_strided_slice %8 {offsets = [8, 0], sizes = [1, 128], strides = [1, 1]} : vector<16x128xf32> to vector<1x128xf32>
    %97 = vector.extract_strided_slice %94 {offsets = [16, 0], sizes = [16, 128], strides = [1, 1]} : vector<32x128xf32> to vector<16x128xf32>
    %98 = vector.extract_strided_slice %94 {offsets = [0, 0], sizes = [16, 128], strides = [1, 1]} : vector<32x128xf32> to vector<16x128xf32>
    %99 = tpu.concatenate %97, %98 in 0 : vector<16x128xf32>, vector<16x128xf32> -> vector<32x128xf32>
    %c0_31 = arith.constant 0 : index
    %c0_32 = arith.constant 0 : index
    %100 = vector.load %arg4[%c0_31, %c0_32] : memref<32x4xf32, #tpu.memory_space<vmem>>, vector<32x1xf32>
    %101 = vector.broadcast %100 : vector<32x1xf32> to vector<32x128xf32>
    %102 = arith.mulf %101, %99 : vector<32x128xf32>
    %103 = vector.broadcast %95 : vector<1x128xf32> to vector<32x128xf32>
    %104 = arith.mulf %103, %94 : vector<32x128xf32>
    %105 = vector.broadcast %96 : vector<1x128xf32> to vector<32x128xf32>
    %106 = arith.mulf %105, %102 : vector<32x128xf32>
    %107 = arith.addf %104, %106 : vector<32x128xf32>
    %108 = vector.extract_strided_slice %5 {offsets = [9, 0], sizes = [1, 128], strides = [1, 1]} : vector<16x128xf32> to vector<1x128xf32>
    %109 = vector.extract_strided_slice %8 {offsets = [9, 0], sizes = [1, 128], strides = [1, 1]} : vector<16x128xf32> to vector<1x128xf32>
    %110 = vector.extract_strided_slice %107 {offsets = [16, 0], sizes = [16, 128], strides = [1, 1]} : vector<32x128xf32> to vector<16x128xf32>
    %111 = vector.extract_strided_slice %107 {offsets = [0, 0], sizes = [16, 128], strides = [1, 1]} : vector<32x128xf32> to vector<16x128xf32>
    %112 = tpu.concatenate %110, %111 in 0 : vector<16x128xf32>, vector<16x128xf32> -> vector<32x128xf32>
    %c0_33 = arith.constant 0 : index
    %c1_34 = arith.constant 1 : index
    %113 = vector.load %arg4[%c0_33, %c1_34] : memref<32x4xf32, #tpu.memory_space<vmem>>, vector<32x1xf32>
    %114 = vector.broadcast %113 : vector<32x1xf32> to vector<32x128xf32>
    %115 = arith.mulf %114, %112 : vector<32x128xf32>
    %116 = vector.broadcast %108 : vector<1x128xf32> to vector<32x128xf32>
    %117 = arith.mulf %116, %107 : vector<32x128xf32>
    %118 = vector.broadcast %109 : vector<1x128xf32> to vector<32x128xf32>
    %119 = arith.mulf %118, %115 : vector<32x128xf32>
    %120 = arith.addf %117, %119 : vector<32x128xf32>
    %121 = vector.extract_strided_slice %5 {offsets = [10, 0], sizes = [1, 128], strides = [1, 1]} : vector<16x128xf32> to vector<1x128xf32>
    %122 = vector.extract_strided_slice %8 {offsets = [10, 0], sizes = [1, 128], strides = [1, 1]} : vector<16x128xf32> to vector<1x128xf32>
    %123 = vector.extract_strided_slice %120 {offsets = [16, 0], sizes = [16, 128], strides = [1, 1]} : vector<32x128xf32> to vector<16x128xf32>
    %124 = vector.extract_strided_slice %120 {offsets = [0, 0], sizes = [16, 128], strides = [1, 1]} : vector<32x128xf32> to vector<16x128xf32>
    %125 = tpu.concatenate %123, %124 in 0 : vector<16x128xf32>, vector<16x128xf32> -> vector<32x128xf32>
    %c0_35 = arith.constant 0 : index
    %c2_36 = arith.constant 2 : index
    %126 = vector.load %arg4[%c0_35, %c2_36] : memref<32x4xf32, #tpu.memory_space<vmem>>, vector<32x1xf32>
    %127 = vector.broadcast %126 : vector<32x1xf32> to vector<32x128xf32>
    %128 = arith.mulf %127, %125 : vector<32x128xf32>
    %129 = vector.broadcast %121 : vector<1x128xf32> to vector<32x128xf32>
    %130 = arith.mulf %129, %120 : vector<32x128xf32>
    %131 = vector.broadcast %122 : vector<1x128xf32> to vector<32x128xf32>
    %132 = arith.mulf %131, %128 : vector<32x128xf32>
    %133 = arith.addf %130, %132 : vector<32x128xf32>
    %134 = vector.extract_strided_slice %5 {offsets = [11, 0], sizes = [1, 128], strides = [1, 1]} : vector<16x128xf32> to vector<1x128xf32>
    %135 = vector.extract_strided_slice %8 {offsets = [11, 0], sizes = [1, 128], strides = [1, 1]} : vector<16x128xf32> to vector<1x128xf32>
    %136 = vector.extract_strided_slice %133 {offsets = [16, 0], sizes = [16, 128], strides = [1, 1]} : vector<32x128xf32> to vector<16x128xf32>
    %137 = vector.extract_strided_slice %133 {offsets = [0, 0], sizes = [16, 128], strides = [1, 1]} : vector<32x128xf32> to vector<16x128xf32>
    %138 = tpu.concatenate %136, %137 in 0 : vector<16x128xf32>, vector<16x128xf32> -> vector<32x128xf32>
    %c0_37 = arith.constant 0 : index
    %c3_38 = arith.constant 3 : index
    %139 = vector.load %arg4[%c0_37, %c3_38] : memref<32x4xf32, #tpu.memory_space<vmem>>, vector<32x1xf32>
    %140 = vector.broadcast %139 : vector<32x1xf32> to vector<32x128xf32>
    %141 = arith.mulf %140, %138 : vector<32x128xf32>
    %142 = vector.broadcast %134 : vector<1x128xf32> to vector<32x128xf32>
    %143 = arith.mulf %142, %133 : vector<32x128xf32>
    %144 = vector.broadcast %135 : vector<1x128xf32> to vector<32x128xf32>
    %145 = arith.mulf %144, %141 : vector<32x128xf32>
    %146 = arith.addf %143, %145 : vector<32x128xf32>
    %147 = vector.extract_strided_slice %5 {offsets = [12, 0], sizes = [1, 128], strides = [1, 1]} : vector<16x128xf32> to vector<1x128xf32>
    %148 = vector.extract_strided_slice %8 {offsets = [12, 0], sizes = [1, 128], strides = [1, 1]} : vector<16x128xf32> to vector<1x128xf32>
    %c0_39 = arith.constant 0 : index
    %c0_40 = arith.constant 0 : index
    %c0_41 = arith.constant 0 : index
    %149 = vector.load %arg3[%c0_39, %c0_40, %c0_41] : memref<8x32x32xf32, #tpu.memory_space<vmem>>, vector<1x32x32xf32>
    %150 = vector.shape_cast %149 : vector<1x32x32xf32> to vector<32x32xf32>
    %cst_42 = arith.constant dense<0.000000e+00> : vector<32x128xf32>
    %151 = tpu.matmul %150, %146, %cst_42 {dimension_numbers = #tpu.dot_dimension_numbers<[1], [0], [0], [1], [0, 0, 1, 1], [], []>} : vector<32x32xf32>, vector<32x128xf32>, vector<32x128xf32> -> vector<32x128xf32>
    %152 = vector.broadcast %147 : vector<1x128xf32> to vector<32x128xf32>
    %153 = arith.mulf %152, %146 : vector<32x128xf32>
    %154 = vector.broadcast %148 : vector<1x128xf32> to vector<32x128xf32>
    %155 = arith.mulf %154, %151 : vector<32x128xf32>
    %156 = arith.addf %153, %155 : vector<32x128xf32>
    %157 = vector.extract_strided_slice %5 {offsets = [13, 0], sizes = [1, 128], strides = [1, 1]} : vector<16x128xf32> to vector<1x128xf32>
    %158 = vector.extract_strided_slice %8 {offsets = [13, 0], sizes = [1, 128], strides = [1, 1]} : vector<16x128xf32> to vector<1x128xf32>
    %c1_43 = arith.constant 1 : index
    %c0_44 = arith.constant 0 : index
    %c0_45 = arith.constant 0 : index
    %159 = vector.load %arg3[%c1_43, %c0_44, %c0_45] : memref<8x32x32xf32, #tpu.memory_space<vmem>>, vector<1x32x32xf32>
    %160 = vector.shape_cast %159 : vector<1x32x32xf32> to vector<32x32xf32>
    %cst_46 = arith.constant dense<0.000000e+00> : vector<32x128xf32>
    %161 = tpu.matmul %160, %156, %cst_46 {dimension_numbers = #tpu.dot_dimension_numbers<[1], [0], [0], [1], [0, 0, 1, 1], [], []>} : vector<32x32xf32>, vector<32x128xf32>, vector<32x128xf32> -> vector<32x128xf32>
    %162 = vector.broadcast %157 : vector<1x128xf32> to vector<32x128xf32>
    %163 = arith.mulf %162, %156 : vector<32x128xf32>
    %164 = vector.broadcast %158 : vector<1x128xf32> to vector<32x128xf32>
    %165 = arith.mulf %164, %161 : vector<32x128xf32>
    %166 = arith.addf %163, %165 : vector<32x128xf32>
    %167 = vector.extract_strided_slice %5 {offsets = [14, 0], sizes = [1, 128], strides = [1, 1]} : vector<16x128xf32> to vector<1x128xf32>
    %168 = vector.extract_strided_slice %8 {offsets = [14, 0], sizes = [1, 128], strides = [1, 1]} : vector<16x128xf32> to vector<1x128xf32>
    %c2_47 = arith.constant 2 : index
    %c0_48 = arith.constant 0 : index
    %c0_49 = arith.constant 0 : index
    %169 = vector.load %arg3[%c2_47, %c0_48, %c0_49] : memref<8x32x32xf32, #tpu.memory_space<vmem>>, vector<1x32x32xf32>
    %170 = vector.shape_cast %169 : vector<1x32x32xf32> to vector<32x32xf32>
    %cst_50 = arith.constant dense<0.000000e+00> : vector<32x128xf32>
    %171 = tpu.matmul %170, %166, %cst_50 {dimension_numbers = #tpu.dot_dimension_numbers<[1], [0], [0], [1], [0, 0, 1, 1], [], []>} : vector<32x32xf32>, vector<32x128xf32>, vector<32x128xf32> -> vector<32x128xf32>
    %172 = vector.broadcast %167 : vector<1x128xf32> to vector<32x128xf32>
    %173 = arith.mulf %172, %166 : vector<32x128xf32>
    %174 = vector.broadcast %168 : vector<1x128xf32> to vector<32x128xf32>
    %175 = arith.mulf %174, %171 : vector<32x128xf32>
    %176 = arith.addf %173, %175 : vector<32x128xf32>
    %177 = vector.extract_strided_slice %5 {offsets = [15, 0], sizes = [1, 128], strides = [1, 1]} : vector<16x128xf32> to vector<1x128xf32>
    %178 = vector.extract_strided_slice %8 {offsets = [15, 0], sizes = [1, 128], strides = [1, 1]} : vector<16x128xf32> to vector<1x128xf32>
    %c3_51 = arith.constant 3 : index
    %c0_52 = arith.constant 0 : index
    %c0_53 = arith.constant 0 : index
    %179 = vector.load %arg3[%c3_51, %c0_52, %c0_53] : memref<8x32x32xf32, #tpu.memory_space<vmem>>, vector<1x32x32xf32>
    %180 = vector.shape_cast %179 : vector<1x32x32xf32> to vector<32x32xf32>
    %cst_54 = arith.constant dense<0.000000e+00> : vector<32x128xf32>
    %181 = tpu.matmul %180, %176, %cst_54 {dimension_numbers = #tpu.dot_dimension_numbers<[1], [0], [0], [1], [0, 0, 1, 1], [], []>} : vector<32x32xf32>, vector<32x128xf32>, vector<32x128xf32> -> vector<32x128xf32>
    %182 = vector.broadcast %177 : vector<1x128xf32> to vector<32x128xf32>
    %183 = arith.mulf %182, %176 : vector<32x128xf32>
    %184 = vector.broadcast %178 : vector<1x128xf32> to vector<32x128xf32>
    %185 = arith.mulf %184, %181 : vector<32x128xf32>
    %186 = arith.addf %183, %185 : vector<32x128xf32>
    %c0_55 = arith.constant 0 : index
    %c0_56 = arith.constant 0 : index
    %187 = vector.load %arg5[%c0_55, %c0_56] : memref<32x32xf32, #tpu.memory_space<vmem>>, vector<32x32xf32>
    %cst_57 = arith.constant dense<0.000000e+00> : vector<32x128xf32>
    %188 = tpu.matmul %187, %186, %cst_57 {dimension_numbers = #tpu.dot_dimension_numbers<[1], [0], [0], [1], [0, 0, 1, 1], [], []>} : vector<32x32xf32>, vector<32x128xf32>, vector<32x128xf32> -> vector<32x128xf32>
    %c0_58 = arith.constant 0 : index
    %c0_59 = arith.constant 0 : index
    %189 = vector.load %arg6[%c0_58, %c0_59] : memref<16x32xf32, #tpu.memory_space<vmem>>, vector<16x32xf32>
    %190 = arith.mulf %188, %188 : vector<32x128xf32>
    %cst_60 = arith.constant dense<0.000000e+00> : vector<16x128xf32>
    %191 = tpu.matmul %189, %190, %cst_60 {dimension_numbers = #tpu.dot_dimension_numbers<[1], [0], [0], [1], [0, 0, 1, 1], [], []>} : vector<16x32xf32>, vector<32x128xf32>, vector<16x128xf32> -> vector<16x128xf32>
    %c0_61 = arith.constant 0 : index
    %c0_62 = arith.constant 0 : index
    %192 = vector.load %arg7[%c0_61, %c0_62] : memref<16x128xf32, #tpu.memory_space<vmem>>, vector<16x128xf32>
    tpu.vector_store %arg7[%c0_61, %c0_62], %191 {strides = array<i32>} : memref<16x128xf32, #tpu.memory_space<vmem>>, vector<16x128xf32>,
    return
  }
  func.func @transform_0(%arg0: i32) -> (i32, i32) {
    %c0_i32 = arith.constant 0 : i32
    %c0_i32_0 = arith.constant 0 : i32
    return %c0_i32, %arg0 : i32, i32
  }
  func.func @transform_1(%arg0: i32) -> (i32, i32) {
    %c0_i32 = arith.constant 0 : i32
    %c0_i32_0 = arith.constant 0 : i32
    return %c0_i32, %arg0 : i32, i32
  }
  func.func @transform_2(%arg0: i32) -> (i32, i32, i32) {
    %c0_i32 = arith.constant 0 : i32
    %c0_i32_0 = arith.constant 0 : i32
    %c0_i32_1 = arith.constant 0 : i32
    %c0_i32_2 = arith.constant 0 : i32
    return %c0_i32, %c0_i32_0, %c0_i32_1 : i32, i32, i32
  }
  func.func @transform_3(%arg0: i32) -> (i32, i32) {
    %c0_i32 = arith.constant 0 : i32
    %c0_i32_0 = arith.constant 0 : i32
    %c0_i32_1 = arith.constant 0 : i32
    return %c0_i32, %c0_i32_0 : i32, i32
  }
  func.func @transform_4(%arg0: i32) -> (i32, i32) {
    %c0_i32 = arith.constant 0 : i32
    %c0_i32_0 = arith.constant 0 : i32
    %c0_i32_1 = arith.constant 0 : i32
    return %c0_i32, %c0_i32_0 : i32, i32
  }
  func.func @transform_5(%arg0: i32) -> (i32, i32) {
    %c0_i32 = arith.constant 0 : i32
    %c0_i32_0 = arith.constant 0 : i32
    %c0_i32_1 = arith.constant 0 : i32
    return %c0_i32, %c0_i32_0 : i32, i32
  }
  func.func @transform_6(%arg0: i32) -> (i32, i32) {
    %c0_i32 = arith.constant 0 : i32
    %c0_i32_0 = arith.constant 0 : i32
    return %c0_i32, %arg0 : i32, i32
  }
}

</mosaic_0001>

<bundles_post_ra>
// kernel: tpu_custom_call.1
= control target key start
LH: loop header
LB: loop body
LE: loop exit
PB: predicated region body
PF: predicated region fallthrough
CT: control target
= control target key end

     0   :  { %11 = vsyncpa [#allocation3], 0  ;;  %s3352_s0 = inlined_call_operand.vmem [shape: f32[16,128], index: 0, kind: input, shape index: {}]   ;;  %s3353_s1 = inlined_call_operand.hbm [shape: f32[16,128], index: 1, kind: input, shape index: {}]   ;;  %s3354_s2 = inlined_call_operand.hbm [shape: f32[8,32,32], index: 2, kind: input, shape index: {}]   ;;  %s3355_s3 = inlined_call_operand.vmem [shape: f32[32,4], index: 3, kind: input, shape index: {}]   ;;  %s3356_s4 = inlined_call_operand.vmem [shape: f32[32,32], index: 4, kind: input, shape index: {}]   ;;  %s3357_s5 = inlined_call_operand.hbm [shape: f32[16,32], index: 5, kind: input, shape index: {}]   ;;  %s3358_s6 = inlined_call_operand.hbm [shape: f32[16,128], index: 6, kind: output, shape index: {}]  }
   0x1   :  { %12 = vsyncpa [#allocation6], 0 }
   0x2   :  { %13 = vsyncpa [#allocation4], 0  ;;  %s2880_s21 = smov [#allocation5]   ;;  %s2881_s23 = smov [#allocation2]  }
   0x3   :  { %s33_s22 = sshll.u32 %s2880_s21, 4  ;;  %s21_s24 = sshll.u32 %s2881_s23, 4  ;;  %s34_s22 = int_to_ptr.vmem [resolvable:$true] %s33_s22  ;;  %s2933_s24 = int_to_ptr.vmem [resolvable:$true] %s21_s24 }
   0x4   :  { %s2786_s27 = scalar_lea.hbm %s3354_s2, 4096 }
   0x5   :  { %p2787_p0 = scmp.ne.s32.totalorder %s3354_s2, %s2786_s27  ;;  %p2790_p1 = scmp.lt.u32.totalorder %s2786_s27, %s3354_s2 }
   0x7   :  { %p2792_p2 = pnand %p2790_p1, %p2787_p0 }
   0x9   :  { %2795 = shalt.err (!%p2792_p2)
}
   0xa   :  { %s2796_s8 = scalar_lea.vmem %s34_s22, 4096  ;;  %p2801_p4 = scmp.lt.s32.totalorder %s34_s22, %s34_s22 }
   0xb   :  { %p2797_p3 = scmp.ne.s32.totalorder %s34_s22, %s2796_s8  ;;  %p2802_p5 = scmp.lt.s32.totalorder %s2796_s8, %s2796_s8 }
   0xd   :  { %p2803_p6 = por %p2802_p5, %p2801_p4 }
   0xf   :  { %p2804_p7 = pnand %p2803_p6, %p2797_p3 }
  0x11   :  { %2807 = shalt.err (!%p2804_p7)
}
  0x12   :  { %s2882_s9 = smov 128   ;;  %s2883_s10 = smov 8  }
  0x13   :  { %39 = dma.hbm_to_vmem [thread:$0]  %s3354_s2, 4096, %s34_s22, [#allocation6], %s2882_s9, %s2882_s9, %s2883_s10  }
  0x14   :  { %s2808_s15 = scalar_lea.hbm %s3353_s1, 256 }
  0x15   :  { %p2809_p8 = scmp.ne.s32.totalorder %s3353_s1, %s2808_s15  ;;  %p2812_p9 = scmp.lt.u32.totalorder %s2808_s15, %s3353_s1 }
  0x17   :  { %p2814_p10 = pnand %p2812_p9, %p2809_p8 }
  0x19   :  { %2817 = shalt.err (!%p2814_p10)
}
  0x1a   :  { %s2818_s20 = scalar_lea.vmem %s2933_s24, 256  ;;  %p2823_p12 = scmp.lt.s32.totalorder %s2933_s24, %s2933_s24 }
  0x1b   :  { %p2819_p11 = scmp.ne.s32.totalorder %s2933_s24, %s2818_s20  ;;  %p2824_p13 = scmp.lt.s32.totalorder %s2818_s20, %s2818_s20 }
  0x1d   :  { %p2825_p0 = por %p2824_p13, %p2823_p12 }
  0x1f   :  { %p2826_p1 = pnand %p2825_p0, %p2819_p11 }
  0x21   :  { %2829 = shalt.err (!%p2826_p1)
}
  0x22   :  { %27 = dma.hbm_to_vmem [thread:$0]  %s3353_s1, 256, %s2933_s24, [#allocation3], %s2882_s9, %s2882_s9, %s2883_s10  }
  0x23   :  { %s2884_s22 = smov [#allocation7]   ;;  %s2830_s27 = scalar_lea.hbm %s3357_s5, 256 }
  0x24   :  { %s49_s23 = sshll.u32 %s2884_s22, 4  ;;  %p2831_p2 = scmp.ne.s32.totalorder %s3357_s5, %s2830_s27  ;;  %s50_s23 = int_to_ptr.vmem [resolvable:$true] %s49_s23 }
  0x25   :  { %p2834_p3 = scmp.lt.u32.totalorder %s2830_s27, %s3357_s5 }
  0x27   :  { %p2836_p4 = pnand %p2834_p3, %p2831_p2 }
  0x29   :  { %2839 = shalt.err (!%p2836_p4)
}
  0x2a   :  { %s2840_s8 = scalar_lea.vmem %s50_s23, 256  ;;  %p2845_p6 = scmp.lt.s32.totalorder %s50_s23, %s50_s23 }
  0x2b   :  { %p2841_p5 = scmp.ne.s32.totalorder %s50_s23, %s2840_s8  ;;  %p2846_p7 = scmp.lt.s32.totalorder %s2840_s8, %s2840_s8 }
  0x2d   :  { %p2847_p8 = por %p2846_p7, %p2845_p6 }
  0x2f   :  { %p2848_p9 = pnand %p2847_p8, %p2841_p5 }
  0x31   :  { %2851 = shalt.err (!%p2848_p9)
}
  0x32   :  { %55 = dma.hbm_to_vmem [thread:$0]  %s3357_s5, 256, %s50_s23, [#allocation6], %s2882_s9, %s2882_s9, %s2883_s10  }
  0x33   :  { %2874 = dma.done.wait [#allocation3], 256  }
  0x34   :  { %2875 = vsyncadd [#allocation3], 4294967040 }
  0x35   :  { %2876 = dma.done.wait [#allocation6], 4352  }
  0x36   :  { %2877 = vsyncadd [#allocation6], 4294962944  ;;  %v487_v0 = vlaneseq  ;;  %v2885_v2 = vmov 1.0   ;;  %vm504_vm1 = vcmask 261120   ;;  %v2992_v3 = vld [vmem:[#allocation5] sm:$0xff]  ;;  %v501_v4 = vld [vmem:[#allocation5 + $0x8] sm:$0xff] }
  0x37   :  { %v502_v5 = vld [vmem:[#allocation5 + $0x10] sm:$0xff]  ;;  %2452 = vmatprep.mubr.msk.f32.mxu0 %vm504_vm1, %v2992_v3  ;;  %v503_v6 = vld [vmem:[#allocation5 + $0x18] sm:$0xff]  ;;  %v2886_v18 = vmov 2102212464   ;;  %v2887_v20 = vmov 920167782  }
  0x38   :  { %v2985_v1 = vshrl.u32 %v487_v0, 7  ;;  %v65_v7 = vld [vmem:[%s3352_s0] sm:$0xff]  ;;  %v2888_v25 = vmov 1326507024   ;;  %v2889_v27 = vmov 683565275  }
  0x39   :  { %v67_v8 = vld [vmem:[#allocation2] sm:$0xff]  ;;  %v2890_v29 = vmov 2475754826   ;;  %v2891_v32 = vmov 2131351028   ;;  %v3038_v62 = vld [vmem:[#allocation5 + $0x20] sm:$0xff] }
  0x3a   :  { %vm492_vm0 = vcmp.eq.s32.totalorder %v2985_v1, 0  ;;  %v69_v9 = vadd.f32 %v67_v8, %v65_v7  ;;  %2466 = vmatprep.mubr.msk.f32.mxu1 %vm504_vm1, %v3038_v62 }
  0x3b   :  { %2450 = vmatprep.subr.msk.mxu0 %vm492_vm0, %v2885_v2 }
  0x3c   :  { %2451 = vmatpush3.msk.msra.mxu0 %vm492_vm0, %v2885_v2  ;;  %v3002_v10 = vmul.f32 0.5, %v69_v9 }
  0x3d   :  { %2453 = vmatmul.mubr.msk.f32.vlgmr.msra.gmra.mrb[0].mxu0 %vm504_vm1, %v501_v4 }
  0x3e   :  { %2455 = vmatprep.mubr.msk.f32.mxu0 %vm504_vm1, %v502_v5  ;;  %v76_v11 = vand.u32 2139095040, %v3002_v10  ;;  %v73_v22 = vand.u32 2147483647, %v3002_v10  ;;  %vm75_vm9 = vcmp.lt.s32.totalorder %v3002_v10, 0 }
  0x40   :  { %v77_v12 = vshrl.u32 %v76_v11, 23  ;;  %v80_v37 = vand.u32 8388607, %v73_v22  ;;  %vm74_vm10 = vcmp.le.f32.partialorder %v73_v22, 0.7853982 }
  0x41   :  { %2456 = vmatmul.mubr.msk.f32.gmra.mrb[2].mxu0 %vm504_vm1, %v503_v6 }
  0x42   :  { %v2272_v13 = vadd.s32 4294967169, %v77_v12  ;;  %v81_v43 = vor.u32 8388608, %v80_v37 }
  0x44   :  { %v83_v14 = vadd.s32 1, %v2272_v13  ;;  %v121_v49 = vshll.u32 %v81_v43, 8 }
  0x46   :  { %vm84_vm2 = vcmp.gt.s32.totalorder %v83_v14, 0 }
  0x47   :  { %v85_v15 = vsel %vm84_vm2, %v83_v14, 0 }
  0x48   :  { %v87_v16 = vand.u32 31, %v85_v15  ;;  %v86_v23 = vshrl.u32 %v85_v15, 5 }
  0x4a   :  { %v88_v17 = vsub.s32 32, %v87_v16  ;;  %v99_v19 = vshll.u32 %v2886_v18, %v87_v16  ;;  %v102_v24 = vshll.u32 %v2887_v20, %v87_v16  ;;  %v90_v28 = vshll.u32 %v2889_v27, %v87_v16 }
  0x4b   :  { %v93_v30 = vshll.u32 %v2890_v29, %v87_v16  ;;  %v96_v34 = vshll.u32 %v2891_v32, %v87_v16  ;;  %vm108_vm3 = vcmp.lt.s32.totalorder %v86_v23, 4  ;;  %vm105_vm4 = vcmp.lt.s32.totalorder %v86_v23, 1 }
  0x4c   :  { %v100_v21 = vshrl.u32 %v2887_v20, %v88_v17  ;;  %v103_v26 = vshrl.u32 %v2888_v25, %v88_v17  ;;  %v91_v31 = vshrl.u32 %v2890_v29, %v88_v17  ;;  %v94_v33 = vshrl.u32 %v2891_v32, %v88_v17 }
  0x4d   :  { %v97_v35 = vshrl.u32 %v2886_v18, %v88_v17  ;;  %vm107_vm5 = vcmp.lt.s32.totalorder %v86_v23, 3  ;;  %vm106_vm6 = vcmp.lt.s32.totalorder %v86_v23, 2  ;;  %v89_v54 = vshrl.u32 %v2889_v27, %v88_v17 }
  0x4e   :  { %v101_v36 = vor.u32 %v100_v21, %v99_v19  ;;  %v104_v38 = vor.u32 %v103_v26, %v102_v24  ;;  %v92_v39 = vor.u32 %v91_v31, %v90_v28  ;;  %v95_v40 = vor.u32 %v94_v33, %v93_v30 }
  0x4f   :  { %v98_v41 = vor.u32 %v97_v35, %v96_v34 }
  0x50   :  { %v114_v42 = vsel %vm108_vm3, %v101_v36, 920167782  ;;  %v118_v44 = vsel %vm108_vm3, %v104_v38, 1326507024  ;;  %v113_v45 = vsel %vm105_vm4, %v92_v39, %v95_v40  ;;  %v109_v58 = vsel %vm105_vm4, %v89_v54, %v92_v39 }
  0x51   :  { %v115_v46 = vsel %vm107_vm5, %v98_v41, %v114_v42  ;;  %v117_v47 = vsel %vm105_vm4, %v95_v40, %v98_v41  ;;  %v119_v48 = vsel %vm107_vm5, %v101_v36, %v118_v44  ;;  %v110_v57 = vsel %vm108_vm3, %v98_v41, 2102212464 }
  0x52   :  { %v116_v50 = vsel %vm106_vm6, %v113_v45, %v115_v46  ;;  %v120_v51 = vsel %vm106_vm6, %v117_v47, %v119_v48  ;;  %v111_v59 = vsel %vm107_vm5, %v95_v40, %v110_v57  ;;  %vm165_vm3 = vweird.f32 %v3002_v10 }
  0x53   :  { %v3026_v52 = vmul.u32.u64.low %v121_v49, %v116_v50  ;;  %v3027_v53 = vmul.u32.u64.high %v121_v49, %v116_v50, %v3026_v52  ;;  %v3030_v55 = vmul.u32.u64.low %v121_v49, %v120_v51  ;;  %v3031_v56 = vmul.u32.u64.high %v121_v49, %v120_v51, %v3030_v55 }
  0x54   :  { %v112_v60 = vsel %vm106_vm6, %v109_v58, %v111_v59  ;;  %v3051_v51 = vsub.s32 0, %v2985_v1  ;;  %v2892_v55 = vmov 0.0  }
  0x55   :  { %v131_v61 = vadd.s32 1, %v3027_v53  ;;  %vm130_vm7 = vc.u32 %v3031_v56, %v3026_v52  ;;  %v128_v63 = vmul.u32 %v121_v49, %v112_v60  ;;  %v129_v15 = vadd.s32 %v3026_v52, %v3031_v56 }
  0x56   :  { %v496_v56 = vsel %vm492_vm0, 1.0, %v2892_v55 }
  0x57   :  { %v132_v0 = vsel %vm130_vm7, %v131_v61, %v3027_v53 }
  0x58   :  { %v133_v2 = vadd.s32 %v132_v0, %v128_v63 }
  0x5a   :  { %v134_v4 = vadd.s32 536870912, %v133_v2 }
  0x5c   :  { %v135_v5 = vshrl.u32 %v134_v4, 30 }
  0x5e   :  { %v136_v6 = vshll.u32 %v135_v5, 30  ;;  %v159_v36 = vsub.s32 4, %v135_v5 }
  0x60   :  { %v137_v7 = vsub.s32 %v133_v2, %v136_v6  ;;  %v160_v37 = vsel %vm75_vm9, %v159_v36, %v135_v5 }
  0x61   :  { %v162_v38 = vsel %vm74_vm10, 0, %v160_v37 }
  0x62   :  { %v139_v8 = vsub.s32 0, %v137_v7  ;;  %v372_v39 = vadd.s32 3, %v162_v38  ;;  %v166_v42 = vand.u32 3, %v162_v38 }
  0x64   :  { %v2273_v9 = vmin.u32 %v139_v8, %v137_v7  ;;  %v373_v43 = vand.u32 3, %v372_v39  ;;  %vm168_vm11 = vcmp.eq.s32.totalorder %v166_v42, 0  ;;  %vm171_vm12 = vcmp.eq.s32.totalorder %v166_v42, 2 }
  0x65   :  { %vm167_vm15 = vcmp.lt.s32.totalorder %v166_v42, 2 }
  0x66   :  { %v141_v11 = vclz %v2273_v9  ;;  %vm375_vm13 = vcmp.eq.s32.totalorder %v373_v43, 0  ;;  %vm378_vm14 = vcmp.eq.s32.totalorder %v373_v43, 2  ;;  %vm374_vm2 = vcmp.lt.s32.totalorder %v373_v43, 2 }
  0x68   :  { %v2274_v12 = vadd.s32 4294967294, %v141_v11 }
  0x6a   :  { %vm2275_vm8 = vcmp.lt.s32.totalorder %v2274_v12, 0 }
  0x6b   :  { %v144_v13 = vsel %vm2275_vm8, 0, %v2274_v12 }
  0x6c   :  { %v149_v14 = vsub.s32 4294967266, %v144_v13  ;;  %v145_v16 = vsub.s32 32, %v144_v13  ;;  %v146_v19 = vshll.u32 %v137_v7, %v144_v13  ;;  %v3063_v13 = vld [vmem:[#allocation5 + $0x28] sm:$0xff] }
  0x6e   :  { %v150_v17 = vadd.s32 127, %v149_v14  ;;  %v147_v21 = vshrl.u32 %v129_v15, %v145_v16  ;;  %v3065_v14 = vld [vmem:[#allocation5 + $0x30] sm:$0xff]  ;;  %v3071_v15 = vld [vmem:[#allocation5 + $0x38] sm:$0xff]  ;;  %v3075_v16 = vld [vmem:[#allocation5 + $0x40] sm:$0xff] }
  0x6f   :  { %2480 = vmatprep.mubr.msk.f32.mxu0 %vm504_vm1, %v3075_v16 }
  0x70   :  { %v151_v23 = vshll.u32 %v150_v17, 23  ;;  %v148_v24 = vor.u32 %v147_v21, %v146_v19  ;;  %v3080_v17 = vsub.s32 1, %v2985_v1 }
  0x72   :  { %v152_v26 = vor.u32 4788187, %v151_v23  ;;  %v155_v30 = vcvt.s32.f32 %v148_v24 }
  0x74   :  { %v153_v28 = vand.u32 2147483647, %v152_v26 }
  0x76   :  { %v156_v31 = vmul.f32 %v155_v30, %v153_v28 }
  0x78   :  { %v157_v33 = vxor.u32 2147483648, %v156_v31 }
  0x7a   :  { %v158_v34 = vsel %vm75_vm9, %v157_v33, %v156_v31 }
  0x7b   :  { %v161_v35 = vsel %vm74_vm10, %v3002_v10, %v158_v34 }
  0x7c   :  { %2775 = vcosq.f32 %v161_v35 }
  0x7d   :  { %2777 = vsinq.f32 %v161_v35 }
  0x86   :  { %v2776_v40 = vpop.eup %2775 }
  0x87   :  { %v2778_v41 = vpop.eup %2777  ;;  %v172_v45 = vxor.u32 2147483648, %v2776_v40 }
  0x88   :  { %v169_v44 = vxor.u32 2147483648, %v2778_v41 }
  0x89   :  { %v173_v46 = vsel %vm171_vm12, %v172_v45, %v2778_v41  ;;  %v380_v48 = vsel %vm378_vm14, %v172_v45, %v2778_v41  ;;  %v3086_v45 = vld [vmem:[#allocation5 + $0x48] sm:$0xff] }
  0x8a   :  { %v170_v22 = vsel %vm168_vm11, %v2776_v40, %v169_v44  ;;  %v377_v47 = vsel %vm375_vm13, %v2776_v40, %v169_v44 }
  0x8b   :  { %v174_v49 = vsel %vm167_vm15, %v170_v22, %v173_v46  ;;  %v381_v50 = vsel %vm374_vm2, %v377_v47, %v380_v48  ;;  %v3088_v22 = vld [vmem:[#allocation5 + $0x50] sm:$0xff]  ;;  %v3094_v46 = vld [vmem:[#allocation5 + $0x58] sm:$0xff]  ;;  %v3098_v47 = vld [vmem:[#allocation5 + $0x60] sm:$0xff]  ;;  %v3103_v48 = vsub.s32 2, %v2985_v1 }
  0x8c   :  { %v3053_v52 = vsel %vm165_vm3, nan, %v174_v49  ;;  %v3055_v53 = vsel %vm165_vm3, nan, %v381_v50 }
  0x8d   :  { %v605_v54 = vrot.slane %v3053_v52, %v3051_v51  ;;  %v613_v57 = vrot.slane %v3055_v53, %v3051_v51  ;;  %v727_v19 = vrot.slane %v3053_v52, %v3080_v17  ;;  %v735_v21 = vrot.slane %v3055_v53, %v3080_v17 }
  0x8e   :  { %v849_v49 = vrot.slane %v3053_v52, %v3103_v48  ;;  %v857_v50 = vrot.slane %v3055_v53, %v3103_v48 }
  0x8f   :  { %v607_v10 = vmul.f32 0.0, %v605_v54  ;;  %v606_v59 = vmul.f32 %v605_v54, %v496_v56 }
 0x110   :  { %v2454_v58 = vpop.f32.mrb[0].mxu0 }
 0x111   :  { %v615_v60 = vmul.f32 %v2454_v58, %v613_v57  ;;  %v583_v61 = vpop.f32.mrb[1].mxu0 }
 0x112   :  { %v614_v63 = vmul.f32 %v613_v57, %v583_v61 }
 0x113   :  { %v619_v0 = vadd.f32 %v615_v60, %v607_v10 }
 0x114   :  { %v618_v2 = vadd.f32 %v614_v63, %v606_v59  ;;  %v2457_v4 = vpop.f32.mrb[2].mxu0 }
 0x115   :  { %v617_v5 = vmul.f32 %v2457_v4, %v613_v57  ;;  %v593_v6 = vpop.f32.mrb[3].mxu0  ;;  %v729_v24 = vmul.f32 %v727_v19, %v619_v0 }
 0x116   :  { %v616_v7 = vmul.f32 %v613_v57, %v593_v6  ;;  %v2637_v8 = vpack.c.bf16 %v619_v0, %v618_v2  ;;  %v728_v30 = vmul.f32 %v727_v19, %v618_v2 }
 0x117   :  { %v621_v9 = vadd.f32 %v617_v5, %v607_v10 }
 0x118   :  { %v620_v11 = vadd.f32 %v616_v7, %v607_v10  ;;  %2638 = vmatprep.subr.bf16.mxu1 %v2637_v8 }
 0x119   :  { %2640 = vmatpush3.bf16.msra.mxu1 %v2637_v8  ;;  %v731_v36 = vmul.f32 %v727_v19, %v621_v9 }
 0x11a   :  { %v2641_v12 = vpack.c.bf16 %v621_v9, %v620_v11  ;;  %v730_v39 = vmul.f32 %v727_v19, %v620_v11  ;;  %v3109_v11 = vld [vmem:[#allocation5 + $0x68] sm:$0xff]  ;;  %v3117_v19 = vld [vmem:[#allocation5 + $0x78] sm:$0xff] }
 0x11c   :  { %2642 = vmatprep.subr.bf16.mxu1 %v2641_v12 }
 0x11d   :  { %2644 = vmatpush3.bf16.msra.mxu1 %v2641_v12  ;;  %v3111_v12 = vld [vmem:[#allocation5 + $0x70] sm:$0xff] }
 0x120   :  { %2467 = vmatmul.mubr.msk.f32.vlgmr.msra.gmra.mrb[0].mxu1 %vm504_vm1, %v3063_v13 }
 0x121   :  { %2469 = vmatprep.mubr.msk.f32.mxu1 %vm504_vm1, %v3065_v14 }
 0x124   :  { %2470 = vmatmul.mubr.msk.f32.gmra.mrb[2].mxu1 %vm504_vm1, %v3071_v15 }
 0x125   :  { %2494 = vmatprep.mubr.msk.f32.mxu1 %vm504_vm1, %v3098_v47 }
 0x1f3   :  { %v2468_v23 = vpop.f32.mrb[0].mxu1 }
 0x1f4   :  { %v737_v26 = vmul.f32 %v2468_v23, %v735_v21  ;;  %v705_v28 = vpop.f32.mrb[1].mxu1  ;;  %v3123_v23 = vsub.s32 3, %v2985_v1 }
 0x1f5   :  { %v736_v31 = vmul.f32 %v735_v21, %v705_v28 }
 0x1f6   :  { %v741_v33 = vadd.f32 %v737_v26, %v729_v24  ;;  %v971_v24 = vrot.slane %v3053_v52, %v3123_v23  ;;  %v979_v26 = vrot.slane %v3055_v53, %v3123_v23 }
 0x1f7   :  { %v740_v34 = vadd.f32 %v736_v31, %v728_v30  ;;  %v2471_v35 = vpop.f32.mrb[2].mxu1 }
 0x1f8   :  { %v739_v37 = vmul.f32 %v2471_v35, %v735_v21  ;;  %v715_v38 = vpop.f32.mrb[3].mxu1  ;;  %v851_v55 = vmul.f32 %v849_v49, %v741_v33 }
 0x1f9   :  { %v738_v40 = vmul.f32 %v735_v21, %v715_v38  ;;  %v2645_v41 = vpack.c.bf16 %v741_v33, %v740_v34  ;;  %v850_v10 = vmul.f32 %v849_v49, %v740_v34  ;;  %v989_v21 = vld [vmem:[#allocation5 + $0x80] sm:$0xff] }
 0x1fa   :  { %v743_v42 = vadd.f32 %v739_v37, %v731_v36 }
 0x1fb   :  { %v742_v43 = vadd.f32 %v738_v40, %v730_v39  ;;  %2646 = vmatprep.subr.bf16.mxu0 %v2645_v41 }
 0x1fc   :  { %2648 = vmatpush3.bf16.msra.mxu0 %v2645_v41  ;;  %v853_v63 = vmul.f32 %v849_v49, %v743_v42 }
 0x1fd   :  { %v2649_v44 = vpack.c.bf16 %v743_v42, %v742_v43  ;;  %v852_v4 = vmul.f32 %v849_v49, %v742_v43 }
 0x1ff   :  { %2650 = vmatprep.subr.bf16.mxu0 %v2649_v44 }
 0x200   :  { %2652 = vmatpush3.bf16.msra.mxu0 %v2649_v44 }
 0x203   :  { %2481 = vmatmul.mubr.msk.f32.vlgmr.msra.gmra.mrb[4].mxu0 %vm504_vm1, %v3086_v45 }
 0x204   :  { %2483 = vmatprep.mubr.msk.f32.mxu0 %vm504_vm1, %v3088_v22 }
 0x207   :  { %2484 = vmatmul.mubr.msk.f32.gmra.mrb[6].mxu0 %vm504_vm1, %v3094_v46 }
 0x208   :  { %2508 = vmatprep.mubr.msk.f32.mxu0 %vm504_vm1, %v989_v21 }
 0x2d6   :  { %v2482_v54 = vpop.f32.mrb[4].mxu0 }
 0x2d7   :  { %v859_v56 = vmul.f32 %v2482_v54, %v857_v50  ;;  %v827_v57 = vpop.f32.mrb[5].mxu0 }
 0x2d8   :  { %v858_v58 = vmul.f32 %v857_v50, %v827_v57  ;;  %v992_v57 = vld [vmem:[#allocation5 + $0x98] sm:$0xff] }
 0x2d9   :  { %v863_v59 = vadd.f32 %v859_v56, %v851_v55  ;;  %v990_v55 = vld [vmem:[#allocation5 + $0x88] sm:$0xff]  ;;  %v991_v56 = vld [vmem:[#allocation5 + $0x90] sm:$0xff] }
 0x2da   :  { %v862_v60 = vadd.f32 %v858_v58, %v850_v10  ;;  %v2485_v61 = vpop.f32.mrb[6].mxu0  ;;  %v1111_v10 = vld [vmem:[#allocation5 + $0xa0] sm:$0xff]  ;;  %v3134_v58 = vsub.s32 4, %v2985_v1 }
 0x2db   :  { %v861_v0 = vmul.f32 %v2485_v61, %v857_v50  ;;  %v837_v2 = vpop.f32.mrb[7].mxu0  ;;  %v973_v30 = vmul.f32 %v971_v24, %v863_v59 }
 0x2dc   :  { %v860_v5 = vmul.f32 %v857_v50, %v837_v2  ;;  %v2653_v6 = vpack.c.bf16 %v863_v59, %v862_v60  ;;  %v972_v34 = vmul.f32 %v971_v24, %v862_v60  ;;  %v1093_v59 = vrot.slane %v3053_v52, %v3134_v58 }
 0x2dd   :  { %v865_v7 = vadd.f32 %v861_v0, %v853_v63  ;;  %v1101_v60 = vrot.slane %v3055_v53, %v3134_v58 }
 0x2de   :  { %v864_v8 = vadd.f32 %v860_v5, %v852_v4  ;;  %2654 = vmatprep.subr.bf16.mxu1 %v2653_v6 }
 0x2df   :  { %2656 = vmatpush3.bf16.msra.mxu1 %v2653_v6  ;;  %v975_v39 = vmul.f32 %v971_v24, %v865_v7 }
 0x2e0   :  { %v2657_v9 = vpack.c.bf16 %v865_v7, %v864_v8  ;;  %v974_v42 = vmul.f32 %v971_v24, %v864_v8 }
 0x2e2   :  { %2658 = vmatprep.subr.bf16.mxu1 %v2657_v9 }
 0x2e3   :  { %2660 = vmatpush3.bf16.msra.mxu1 %v2657_v9 }
 0x2e6   :  { %2495 = vmatmul.mubr.msk.f32.vlgmr.msra.gmra.mrb[4].mxu1 %vm504_vm1, %v3109_v11 }
 0x2e7   :  { %2497 = vmatprep.mubr.msk.f32.mxu1 %vm504_vm1, %v3111_v12 }
 0x2ea   :  { %2498 = vmatmul.mubr.msk.f32.gmra.mrb[6].mxu1 %vm504_vm1, %v3117_v19 }
 0x2eb   :  { %2522 = vmatprep.mubr.msk.f32.mxu1 %vm504_vm1, %v1111_v10 }
 0x3b9   :  { %v2496_v28 = vpop.f32.mrb[4].mxu1 }
 0x3ba   :  { %v981_v31 = vmul.f32 %v2496_v28, %v979_v26  ;;  %v949_v33 = vpop.f32.mrb[5].mxu1 }
 0x3bb   :  { %v980_v35 = vmul.f32 %v979_v26, %v949_v33 }
 0x3bc   :  { %v985_v36 = vadd.f32 %v981_v31, %v973_v30 }
 0x3bd   :  { %v984_v37 = vadd.f32 %v980_v35, %v972_v34  ;;  %v2499_v38 = vpop.f32.mrb[6].mxu1  ;;  %v1112_v35 = vld [vmem:[#allocation5 + $0xa8] sm:$0xff] }
 0x3be   :  { %v983_v40 = vmul.f32 %v2499_v38, %v979_v26  ;;  %v959_v41 = vpop.f32.mrb[7].mxu1  ;;  %v1095_v63 = vmul.f32 %v1093_v59, %v985_v36  ;;  %v1233_v38 = vld [vmem:[#allocation5 + $0xc0] sm:$0xff] }
 0x3bf   :  { %v982_v43 = vmul.f32 %v979_v26, %v959_v41  ;;  %v2661_v44 = vpack.c.bf16 %v985_v36, %v984_v37  ;;  %v1094_v4 = vmul.f32 %v1093_v59, %v984_v37  ;;  %v1113_v36 = vld [vmem:[#allocation5 + $0xb0] sm:$0xff]  ;;  %v1114_v37 = vld [vmem:[#allocation5 + $0xb8] sm:$0xff] }
 0x3c0   :  { %v987_v49 = vadd.f32 %v983_v40, %v975_v39  ;;  %v3145_v39 = vsub.s32 5, %v2985_v1 }
 0x3c1   :  { %v986_v50 = vadd.f32 %v982_v43, %v974_v42  ;;  %2662 = vmatprep.subr.bf16.mxu0 %v2661_v44 }
 0x3c2   :  { %2664 = vmatpush3.bf16.msra.mxu0 %v2661_v44  ;;  %v1097_v9 = vmul.f32 %v1093_v59, %v987_v49  ;;  %v1215_v40 = vrot.slane %v3053_v52, %v3145_v39  ;;  %v1223_v41 = vrot.slane %v3055_v53, %v3145_v39 }
 0x3c3   :  { %v2665_v54 = vpack.c.bf16 %v987_v49, %v986_v50  ;;  %v1096_v26 = vmul.f32 %v1093_v59, %v986_v50 }
 0x3c5   :  { %2666 = vmatprep.subr.bf16.mxu0 %v2665_v54 }
 0x3c6   :  { %2668 = vmatpush3.bf16.msra.mxu0 %v2665_v54 }
 0x3c9   :  { %2509 = vmatmul.mubr.msk.f32.vlgmr.msra.gmra.mrb[8].mxu0 %vm504_vm1, %v990_v55 }
 0x3ca   :  { %2511 = vmatprep.mubr.msk.f32.mxu0 %vm504_vm1, %v991_v56 }
 0x3cd   :  { %2512 = vmatmul.mubr.msk.f32.gmra.mrb[10].mxu0 %vm504_vm1, %v992_v57 }
 0x3ce   :  { %2536 = vmatprep.mubr.msk.f32.mxu0 %vm504_vm1, %v1233_v38 }
 0x49c   :  { %v2510_v61 = vpop.f32.mrb[8].mxu0 }
 0x49d   :  { %v1103_v0 = vmul.f32 %v2510_v61, %v1101_v60  ;;  %v1071_v2 = vpop.f32.mrb[9].mxu0 }
 0x49e   :  { %v1102_v5 = vmul.f32 %v1101_v60, %v1071_v2 }
 0x49f   :  { %v1107_v6 = vadd.f32 %v1103_v0, %v1095_v63 }
 0x4a0   :  { %v1106_v7 = vadd.f32 %v1102_v5, %v1094_v4  ;;  %v2513_v8 = vpop.f32.mrb[10].mxu0 }
 0x4a1   :  { %v1105_v21 = vmul.f32 %v2513_v8, %v1101_v60  ;;  %v1081_v24 = vpop.f32.mrb[11].mxu0  ;;  %v1217_v43 = vmul.f32 %v1215_v40, %v1107_v6  ;;  %v1236_v8 = vld [vmem:[#allocation5 + $0xd8] sm:$0xff] }
 0x4a2   :  { %v1104_v28 = vmul.f32 %v1101_v60, %v1081_v24  ;;  %v2669_v30 = vpack.c.bf16 %v1107_v6, %v1106_v7  ;;  %v1216_v50 = vmul.f32 %v1215_v40, %v1106_v7  ;;  %v1234_v6 = vld [vmem:[#allocation5 + $0xc8] sm:$0xff]  ;;  %v1235_v7 = vld [vmem:[#allocation5 + $0xd0] sm:$0xff]  ;;  %v1478_v24 = vld [vmem:[%s3355_s3 + $0x10] sm:$0xff] }
 0x4a3   :  { %v1109_v31 = vadd.f32 %v1105_v21, %v1097_v9  ;;  %v1355_v9 = vld [vmem:[#allocation5 + $0xe0] sm:$0xff]  ;;  %v1476_v21 = vld [vmem:[%s3355_s3] sm:$0xff] }
 0x4a4   :  { %v1108_v33 = vadd.f32 %v1104_v28, %v1096_v26  ;;  %2670 = vmatprep.subr.bf16.mxu1 %v2669_v30  ;;  %v2893_v26 = vmov 0   ;;  %v1479_v28 = vld [vmem:[%s3355_s3 + $0x18] sm:$0xff] }
 0x4a5   :  { %2672 = vmatpush3.bf16.msra.mxu1 %v2669_v30  ;;  %v1219_v10 = vmul.f32 %v1215_v40, %v1109_v31  ;;  %2768 = vset.pattern.permute.xlu1 %v2893_v26  ;;  %v2894_v30 = vmov 1  }
 0x4a6   :  { %v2673_v34 = vpack.c.bf16 %v1109_v31, %v1108_v33  ;;  %v1218_v61 = vmul.f32 %v1215_v40, %v1108_v33  ;;  %2767 = vset.pattern.permute.xlu0 %v2893_v26  ;;  %1482 = vperm.xlu1 %2768, %v1476_v21   ;;  %v2895_v31 = vmov 2   ;;  %v2896_v33 = vmov 3  }
 0x4a7   :  { %1492 = vperm.xlu0 %2767, %v1478_v24  }
 0x4a8   :  { %2674 = vmatprep.subr.bf16.mxu1 %v2673_v34 }
 0x4a9   :  { %2676 = vmatpush3.bf16.msra.mxu1 %v2673_v34  ;;  %v3173_v34 = vsub.s32 6, %v2985_v1 }
 0x4ab   :  { %1497 = vperm.xlu0 %2767, %v1479_v28  }
 0x4ac   :  { %2523 = vmatmul.mubr.msk.f32.vlgmr.msra.gmra.mrb[8].mxu1 %vm504_vm1, %v1112_v35  ;;  %v1337_v35 = vrot.slane %v3053_v52, %v3173_v34 }
 0x4ad   :  { %2525 = vmatprep.mubr.msk.f32.mxu1 %vm504_vm1, %v1113_v36  ;;  %v1345_v36 = vrot.slane %v3055_v53, %v3173_v34 }
 0x4af   :  { %2769 = vset.pattern.permute.xlu0 %v2894_v30 }
 0x4b0   :  { %2526 = vmatmul.mubr.msk.f32.gmra.mrb[10].mxu1 %vm504_vm1, %v1114_v37  ;;  %1525 = vperm.xlu0 %2769, %v1476_v21  }
 0x4b1   :  { %2550 = vmatprep.mubr.msk.f32.mxu1 %vm504_vm1, %v1355_v9 }
 0x4b4   :  { %1537 = vperm.xlu0 %2769, %v1479_v28  }
 0x4b8   :  { %2772 = vset.pattern.permute.xlu0 %v2895_v31 }
 0x4b9   :  { %1577 = vperm.xlu0 %2772, %v1479_v28  }
 0x4bd   :  { %2773 = vset.pattern.permute.xlu0 %v2896_v33 }
 0x4be   :  { %1605 = vperm.xlu0 %2773, %v1476_v21  }
 0x4c2   :  { %1617 = vperm.xlu0 %2773, %v1479_v28  }
 0x57f   :  { %v2524_v42 = vpop.f32.mrb[8].mxu1 }
 0x580   :  { %v1225_v44 = vmul.f32 %v2524_v42, %v1223_v41  ;;  %v1193_v49 = vpop.f32.mrb[9].mxu1 }
 0x581   :  { %v1224_v54 = vmul.f32 %v1223_v41, %v1193_v49 }
 0x582   :  { %v1229_v55 = vadd.f32 %v1225_v44, %v1217_v43 }
 0x583   :  { %v3151_v56 = vadd.f32 %v1224_v54, %v1216_v50  ;;  %v2527_v57 = vpop.f32.mrb[10].mxu1 }
 0x584   :  { %v1227_v59 = vmul.f32 %v2527_v57, %v1223_v41  ;;  %v1203_v60 = vpop.f32.mrb[11].mxu1  ;;  %v1339_v38 = vmul.f32 %v1337_v35, %v1229_v55 }
 0x585   :  { %v1226_v63 = vmul.f32 %v1223_v41, %v1203_v60  ;;  %v2677_v0 = vpack.c.bf16 %v1229_v55, %v3151_v56  ;;  %v1338_v42 = vmul.f32 %v1337_v35, %v3151_v56 }
 0x586   :  { %v1231_v2 = vadd.f32 %v1227_v59, %v1219_v10 }
 0x587   :  { %v1230_v4 = vadd.f32 %v1226_v63, %v1218_v61  ;;  %2678 = vmatprep.subr.bf16.mxu0 %v2677_v0 }
 0x588   :  { %2680 = vmatpush3.bf16.msra.mxu0 %v2677_v0  ;;  %v1341_v54 = vmul.f32 %v1337_v35, %v1231_v2  ;;  %v1356_v0 = vld [vmem:[#allocation5 + $0xe8] sm:$0xff] }
 0x589   :  { %v2681_v5 = vpack.c.bf16 %v1231_v2, %v1230_v4  ;;  %v1340_v59 = vmul.f32 %v1337_v35, %v1230_v4  ;;  %v1357_v2 = vld [vmem:[#allocation5 + $0xf0] sm:$0xff]  ;;  %v1358_v4 = vld [vmem:[#allocation5 + $0xf8] sm:$0xff] }
 0x58b   :  { %2682 = vmatprep.subr.bf16.mxu0 %v2681_v5 }
 0x58c   :  { %2684 = vmatpush3.bf16.msra.mxu0 %v2681_v5  ;;  %v66_v5 = vld [vmem:[%s3352_s0 + $0x8] sm:$0xff] }
 0x58f   :  { %2537 = vmatmul.mubr.msk.f32.vlgmr.msra.gmra.mrb[12].mxu0 %vm504_vm1, %v1234_v6  ;;  %v68_v6 = vld [vmem:[#allocation2 + $0x8] sm:$0xff] }
 0x590   :  { %2539 = vmatprep.mubr.msk.f32.mxu0 %vm504_vm1, %v1235_v7  ;;  %v70_v7 = vadd.f32 %v68_v6, %v66_v5 }
 0x593   :  { %2540 = vmatmul.mubr.msk.f32.gmra.mrb[14].mxu0 %vm504_vm1, %v1236_v8  ;;  %v3200_v8 = vmul.f32 0.5, %v70_v7 }
 0x594   :  { %2564 = vmatprep.mubr.msk.f32.mxu0 %vm504_vm1, %v2992_v3  ;;  %v1477_v3 = vld [vmem:[%s3355_s3 + $0x8] sm:$0xff] }
 0x595   :  { %1487 = vperm.xlu1 %2768, %v1477_v3   ;;  %v179_v9 = vand.u32 2139095040, %v3200_v8  ;;  %v176_v35 = vand.u32 2147483647, %v3200_v8  ;;  %vm178_vm10 = vcmp.lt.s32.totalorder %v3200_v8, 0 }
 0x597   :  { %vm177_vm11 = vcmp.le.f32.partialorder %v176_v35, 0.7853982 }
 0x599   :  { %2770 = vset.pattern.permute.xlu1 %v2894_v30 }
 0x59a   :  { %1529 = vperm.xlu1 %2770, %v1477_v3  }
 0x59e   :  { %1533 = vperm.xlu1 %2770, %v1478_v24  }
 0x5a2   :  { %2771 = vset.pattern.permute.xlu1 %v2895_v31 }
 0x5a3   :  { %1573 = vperm.xlu1 %2771, %v1478_v24  }
 0x5a7   :  { %1565 = vperm.xlu1 %2771, %v1476_v21   ;;  %v180_v21 = vshrl.u32 %v179_v9, 23 }
 0x5ab   :  { %1569 = vperm.xlu1 %2771, %v1477_v3  }
 0x5af   :  { %2774 = vset.pattern.permute.xlu1 %v2896_v33 }
 0x5b0   :  { %1609 = vperm.xlu1 %2774, %v1477_v3  }
 0x5b4   :  { %1613 = vperm.xlu1 %2774, %v1478_v24   ;;  %v2276_v24 = vadd.s32 4294967169, %v180_v21 }
 0x5b6   :  { %v186_v26 = vadd.s32 1, %v2276_v24 }
 0x5b8   :  { %vm187_vm0 = vcmp.gt.s32.totalorder %v186_v26, 0 }
 0x5b9   :  { %v188_v3 = vsel %vm187_vm0, %v186_v26, 0  ;;  %vm268_vm0 = vweird.f32 %v3200_v8 }
 0x5ba   :  { %v190_v28 = vand.u32 31, %v188_v3 }
 0x5bc   :  { %v191_v30 = vsub.s32 32, %v190_v28  ;;  %v202_v31 = vshll.u32 %v2886_v18, %v190_v28 }
 0x5be   :  { %v206_v33 = vshrl.u32 %v2888_v25, %v191_v30  ;;  %v183_v25 = vand.u32 8388607, %v176_v35  ;;  %v192_v9 = vshrl.u32 %v2889_v27, %v191_v30  ;;  %v3246_v35 = vsub.s32 7, %v2985_v1 }
 0x662   :  { %v2538_v37 = vpop.f32.mrb[12].mxu0 }
 0x663   :  { %v1347_v40 = vmul.f32 %v2538_v37, %v1345_v36  ;;  %v1315_v41 = vpop.f32.mrb[13].mxu0  ;;  %v205_v37 = vshll.u32 %v2887_v20, %v190_v28 }
 0x664   :  { %v1346_v43 = vmul.f32 %v1345_v36, %v1315_v41  ;;  %v196_v41 = vshll.u32 %v2890_v29, %v190_v28 }
 0x665   :  { %v3180_v44 = vadd.f32 %v1347_v40, %v1339_v38  ;;  %v193_v38 = vshll.u32 %v2889_v27, %v190_v28  ;;  %v194_v40 = vshrl.u32 %v2890_v29, %v191_v30  ;;  %v184_v29 = vor.u32 8388608, %v183_v25 }
 0x666   :  { %v3182_v49 = vadd.f32 %v1346_v43, %v1338_v42  ;;  %v2541_v50 = vpop.f32.mrb[14].mxu0  ;;  %v197_v42 = vshrl.u32 %v2891_v32, %v191_v30  ;;  %v199_v43 = vshll.u32 %v2891_v32, %v190_v28 }
 0x667   :  { %v1349_v57 = vmul.f32 %v2541_v50, %v1345_v36  ;;  %v1325_v10 = vpop.f32.mrb[15].mxu0  ;;  %v200_v50 = vshrl.u32 %v2886_v18, %v191_v30 }
 0x668   :  { %v1348_v60 = vmul.f32 %v1345_v36, %v1325_v10  ;;  %v2685_v61 = vpack.c.bf16 %v3180_v44, %v3182_v49  ;;  %v189_v36 = vshrl.u32 %v188_v3, 5  ;;  %v195_v10 = vor.u32 %v194_v40, %v193_v38 }
 0x669   :  { %v3186_v63 = vadd.f32 %v1349_v57, %v1341_v54  ;;  %v207_v57 = vor.u32 %v206_v33, %v205_v37 }
 0x66a   :  { %v3188_v55 = vadd.f32 %v1348_v60, %v1340_v59  ;;  %2686 = vmatprep.subr.bf16.mxu1 %v2685_v61  ;;  %vm211_vm4 = vcmp.lt.s32.totalorder %v189_v36, 4  ;;  %v201_v59 = vor.u32 %v200_v50, %v199_v43  ;;  %vm208_vm5 = vcmp.lt.s32.totalorder %v189_v36, 1 }
 0x66b   :  { %2688 = vmatpush3.bf16.msra.mxu1 %v2685_v61  ;;  %vm210_vm6 = vcmp.lt.s32.totalorder %v189_v36, 3  ;;  %v221_v61 = vsel %vm211_vm4, %v207_v57, 1326507024  ;;  %vm209_vm7 = vcmp.lt.s32.totalorder %v189_v36, 2  ;;  %v212_v3 = vsel %vm208_vm5, %v192_v9, %v195_v10  ;;  %v1483_v9 = vpop.permute.xlu1 %1482 }
 0x66c   :  { %v2689_v56 = vpack.c.bf16 %v3186_v63, %v3188_v55  ;;  %v213_v26 = vsel %vm211_vm4, %v201_v59, 2102212464 }
 0x66e   :  { %2690 = vmatprep.subr.bf16.mxu1 %v2689_v56 }
 0x66f   :  { %2692 = vmatpush3.bf16.msra.mxu1 %v2689_v56 }
 0x672   :  { %2551 = vmatmul.mubr.msk.f32.vlgmr.msra.gmra.mrb[12].mxu1 %vm504_vm1, %v1356_v0 }
 0x673   :  { %2553 = vmatprep.mubr.msk.f32.mxu1 %vm504_vm1, %v1357_v2  ;;  %v224_v2 = vshll.u32 %v184_v29, 8 }
 0x676   :  { %2554 = vmatmul.mubr.msk.f32.gmra.mrb[14].mxu1 %vm504_vm1, %v1358_v4 }
 0x677   :  { %2578 = vmatprep.mubr.msk.f32.mxu1 %vm504_vm1, %v3038_v62  ;;  %v203_v62 = vshrl.u32 %v2887_v20, %v191_v30  ;;  %v198_v20 = vor.u32 %v197_v42, %v196_v41 }
 0x679   :  { %v204_v54 = vor.u32 %v203_v62, %v202_v31  ;;  %v216_v32 = vsel %vm208_vm5, %v195_v10, %v198_v20  ;;  %v220_v56 = vsel %vm208_vm5, %v198_v20, %v201_v59  ;;  %v214_v28 = vsel %vm210_vm6, %v198_v20, %v213_v26  ;;  %v1488_v26 = vpop.permute.xlu1 %1487 }
 0x67a   :  { %v215_v31 = vsel %vm209_vm7, %v212_v3, %v214_v28 }
 0x67b   :  { %v217_v60 = vsel %vm211_vm4, %v204_v54, 920167782  ;;  %v222_v0 = vsel %vm210_vm6, %v204_v54, %v221_v61  ;;  %v231_v33 = vmul.u32 %v224_v2, %v215_v31  ;;  %v1493_v31 = vpop.permute.xlu0 %1492 }
 0x67c   :  { %v218_v18 = vsel %vm210_vm6, %v201_v59, %v217_v60  ;;  %v223_v5 = vsel %vm209_vm7, %v220_v56, %v222_v0 }
 0x67d   :  { %v219_v4 = vsel %vm209_vm7, %v216_v32, %v218_v18  ;;  %v3228_v21 = vmul.u32.u64.low %v224_v2, %v223_v5  ;;  %v3229_v24 = vmul.u32.u64.high %v224_v2, %v223_v5, %v3228_v21 }
 0x67e   :  { %v3224_v6 = vmul.u32.u64.low %v224_v2, %v219_v4  ;;  %v3225_v7 = vmul.u32.u64.high %v224_v2, %v219_v4, %v3224_v6 }
 0x680   :  { %v234_v62 = vadd.s32 1, %v3225_v7  ;;  %vm233_vm8 = vc.u32 %v3229_v24, %v3224_v6  ;;  %v232_v57 = vadd.s32 %v3224_v6, %v3229_v24 }
 0x682   :  { %v235_v37 = vsel %vm233_vm8, %v234_v62, %v3225_v7 }
 0x683   :  { %v236_v38 = vadd.s32 %v235_v37, %v231_v33  ;;  %v3243_v37 = vpop.permute.xlu1 %1529 }
 0x685   :  { %v237_v27 = vadd.s32 536870912, %v236_v38 }
 0x687   :  { %v238_v30 = vshrl.u32 %v237_v27, 30 }
 0x689   :  { %v239_v40 = vshll.u32 %v238_v30, 30  ;;  %v262_v5 = vsub.s32 4, %v238_v30 }
 0x68b   :  { %v240_v41 = vsub.s32 %v236_v38, %v239_v40  ;;  %v263_v7 = vsel %vm178_vm10, %v262_v5, %v238_v30  ;;  %v1498_v30 = vpop.permute.xlu0 %1497 }
 0x68c   :  { %v265_v21 = vsel %vm177_vm11, 0, %v263_v7 }
 0x68d   :  { %v242_v42 = vsub.s32 0, %v240_v41  ;;  %v476_v24 = vadd.s32 3, %v265_v21  ;;  %v269_v33 = vand.u32 3, %v265_v21 }
 0x68f   :  { %v2277_v43 = vmin.u32 %v242_v42, %v240_v41  ;;  %v477_v3 = vand.u32 3, %v476_v24  ;;  %vm271_vm14 = vcmp.eq.s32.totalorder %v269_v33, 0  ;;  %vm274_vm15 = vcmp.eq.s32.totalorder %v269_v33, 2 }
 0x690   :  { %v1467_v42 = vrot.slane %v3055_v53, %v3246_v35  ;;  %vm270_vm3 = vcmp.lt.s32.totalorder %v269_v33, 2 }
 0x691   :  { %v244_v50 = vclz %v2277_v43  ;;  %vm479_vm12 = vcmp.eq.s32.totalorder %v477_v3, 0  ;;  %vm482_vm13 = vcmp.eq.s32.totalorder %v477_v3, 2  ;;  %vm478_vm2 = vcmp.lt.s32.totalorder %v477_v3, 2 }
 0x692   :  { %v1459_v43 = vrot.slane %v3053_v52, %v3246_v35 }
 0x693   :  { %v2278_v54 = vadd.s32 4294967294, %v244_v50 }
 0x694   :  { %v1460_v53 = vmul.f32 %v1459_v43, %v3182_v49  ;;  %v1462_v7 = vmul.f32 %v1459_v43, %v3188_v55 }
 0x695   :  { %vm2279_vm9 = vcmp.lt.s32.totalorder %v2278_v54, 0 }
 0x696   :  { %v247_v25 = vsel %vm2279_vm9, 0, %v2278_v54  ;;  %v1534_v54 = vpop.permute.xlu1 %1533 }
 0x697   :  { %v252_v36 = vsub.s32 4294967266, %v247_v25  ;;  %v248_v10 = vsub.s32 32, %v247_v25  ;;  %v249_v59 = vshll.u32 %v240_v41, %v247_v25 }
 0x699   :  { %v253_v20 = vadd.s32 127, %v252_v36  ;;  %v250_v60 = vshrl.u32 %v232_v57, %v248_v10  ;;  %v1461_v10 = vmul.f32 %v1459_v43, %v3180_v44  ;;  %v1463_v44 = vmul.f32 %v1459_v43, %v3186_v63 }
 0x69b   :  { %v254_v29 = vshll.u32 %v253_v20, 23  ;;  %v251_v61 = vor.u32 %v250_v60, %v249_v59 }
 0x69d   :  { %v255_v32 = vor.u32 4788187, %v254_v29  ;;  %v258_v56 = vcvt.s32.f32 %v251_v61  ;;  %v1526_v61 = vpop.permute.xlu0 %1525 }
 0x69f   :  { %v256_v18 = vand.u32 2147483647, %v255_v32 }
 0x6a1   :  { %v259_v0 = vmul.f32 %v258_v56, %v256_v18 }
 0x6a3   :  { %v260_v2 = vxor.u32 2147483648, %v259_v0 }
 0x6a5   :  { %v261_v4 = vsel %vm178_vm10, %v260_v2, %v259_v0 }
 0x6a6   :  { %v264_v6 = vsel %vm177_vm11, %v3200_v8, %v261_v4  ;;  %v1574_v8 = vpop.permute.xlu1 %1573 }
 0x6a7   :  { %2779 = vcosq.f32 %v264_v6 }
 0x6a8   :  { %2781 = vsinq.f32 %v264_v6 }
 0x6b1   :  { %v2780_v28 = vpop.eup %2779 }
 0x6b2   :  { %v2782_v62 = vpop.eup %2781  ;;  %v275_v27 = vxor.u32 2147483648, %v2780_v28 }
 0x6b3   :  { %v272_v38 = vxor.u32 2147483648, %v2782_v62 }
 0x6b4   :  { %v484_v41 = vsel %vm482_vm13, %v275_v27, %v2782_v62  ;;  %v276_v1 = vsel %vm274_vm15, %v275_v27, %v2782_v62 }
 0x6b5   :  { %v481_v40 = vsel %vm479_vm12, %v2780_v28, %v272_v38  ;;  %v273_v50 = vsel %vm271_vm14, %v2780_v28, %v272_v38  ;;  %v1538_v28 = vpop.permute.xlu0 %1537 }
 0x6b6   :  { %v485_v25 = vsel %vm478_vm2, %v481_v40, %v484_v41  ;;  %v277_v20 = vsel %vm270_vm3, %v273_v50, %v276_v1  ;;  %v1566_v41 = vpop.permute.xlu1 %1565 }
 0x6b7   :  { %v3254_v60 = vsel %vm268_vm0, nan, %v485_v25  ;;  %v3257_v32 = vsel %vm268_vm0, nan, %v277_v20 }
 0x6b8   :  { %v1515_v2 = vrot.slane %v3254_v60, %v3051_v51  ;;  %v1507_v21 = vrot.slane %v3257_v32, %v3051_v51  ;;  %v1555_v63 = vrot.slane %v3254_v60, %v3080_v17  ;;  %v1547_v25 = vrot.slane %v3257_v32, %v3080_v17 }
 0x6b9   :  { %v1578_v51 = vpop.permute.xlu0 %1577 }
 0x745   :  { %v2552_v36 = vpop.f32.mrb[12].mxu1 }
 0x746   :  { %v1469_v57 = vmul.f32 %v2552_v36, %v1467_v42  ;;  %v1437_v59 = vpop.f32.mrb[13].mxu1 }
 0x747   :  { %v1468_v29 = vmul.f32 %v1467_v42, %v1437_v59 }
 0x748   :  { %v1473_v52 = vadd.f32 %v1469_v57, %v1461_v10 }
 0x749   :  { %v1472_v18 = vadd.f32 %v1468_v29, %v1460_v53  ;;  %v2555_v56 = vpop.f32.mrb[14].mxu1 }
 0x74a   :  { %v1503_v0 = vmul.f32 %v1498_v30, %v1473_v52  ;;  %v1471_v4 = vmul.f32 %v2555_v56, %v1467_v42  ;;  %v1447_v5 = vpop.f32.mrb[15].mxu1 }
 0x74b   :  { %v1502_v6 = vmul.f32 %v1493_v31, %v1472_v18  ;;  %v1470_v49 = vmul.f32 %v1467_v42, %v1447_v5  ;;  %v1509_v31 = vmul.f32 %v1507_v21, %v1473_v52  ;;  %v1508_v42 = vmul.f32 %v1507_v21, %v1472_v18 }
 0x74c   :  { %v1475_v24 = vadd.f32 %v1471_v4, %v1463_v44  ;;  %v1519_v62 = vmul.f32 %v1515_v2, %v1503_v0  ;;  %v1595_v18 = vrot.slane %v3254_v60, %v3103_v48  ;;  %v1570_v0 = vpop.permute.xlu1 %1569 }
 0x74d   :  { %v1474_v3 = vadd.f32 %v1470_v49, %v1462_v7  ;;  %v1518_v40 = vmul.f32 %v1515_v2, %v1502_v6  ;;  %v1606_v6 = vpop.permute.xlu0 %1605 }
 0x74e   :  { %v1501_v33 = vmul.f32 %v1488_v26, %v1475_v24  ;;  %v1511_v38 = vmul.f32 %v1507_v21, %v1475_v24 }
 0x74f   :  { %v1500_v27 = vmul.f32 %v1483_v9, %v1474_v3  ;;  %v1510_v30 = vmul.f32 %v1507_v21, %v1474_v3 }
 0x750   :  { %v1517_v50 = vmul.f32 %v1515_v2, %v1501_v33  ;;  %v1523_v55 = vadd.f32 %v1519_v62, %v1511_v38  ;;  %v1610_v3 = vpop.permute.xlu1 %1609 }
 0x751   :  { %v1516_v43 = vmul.f32 %v1515_v2, %v1500_v27  ;;  %v1522_v1 = vadd.f32 %v1518_v40, %v1510_v30  ;;  %v1635_v30 = vrot.slane %v3254_v60, %v3123_v23 }
 0x752   :  { %v1521_v36 = vadd.f32 %v1517_v50, %v1509_v31  ;;  %v1541_v26 = vmul.f32 %v3243_v37, %v1523_v55  ;;  %v1551_v2 = vmul.f32 %v1547_v25, %v1523_v55  ;;  %v1618_v55 = vpop.permute.xlu0 %1617 }
 0x753   :  { %v1520_v9 = vadd.f32 %v1516_v43, %v1508_v42  ;;  %v1540_v57 = vmul.f32 %v1526_v61, %v1522_v1  ;;  %v1550_v17 = vmul.f32 %v1547_v25, %v1522_v1  ;;  %v1587_v61 = vrot.slane %v3257_v32, %v3103_v48 }
 0x754   :  { %v1543_v10 = vmul.f32 %v1538_v28, %v1521_v36  ;;  %v1549_v20 = vmul.f32 %v1547_v25, %v1521_v36  ;;  %v1557_v59 = vmul.f32 %v1555_v63, %v1541_v26  ;;  %v1627_v48 = vrot.slane %v3257_v32, %v3123_v23  ;;  %v1614_v26 = vpop.permute.xlu1 %1613 }
 0x755   :  { %v1548_v53 = vmul.f32 %v1547_v25, %v1520_v9  ;;  %v1556_v29 = vmul.f32 %v1555_v63, %v1540_v57  ;;  %v1542_v52 = vmul.f32 %v1534_v54, %v1520_v9 }
 0x756   :  { %v1559_v56 = vmul.f32 %v1555_v63, %v1543_v10  ;;  %v1561_v44 = vadd.f32 %v1557_v59, %v1549_v20 }
 0x757   :  { %v1560_v4 = vadd.f32 %v1556_v29, %v1548_v53  ;;  %v1558_v5 = vmul.f32 %v1555_v63, %v1542_v52 }
 0x758   :  { %v1563_v37 = vadd.f32 %v1559_v56, %v1551_v2  ;;  %v1583_v7 = vmul.f32 %v1578_v51, %v1561_v44  ;;  %v1589_v63 = vmul.f32 %v1587_v61, %v1561_v44  ;;  %v2783_v44 = vld [vmem:[#allocation5 + $0x8] sm:$0xff] }
 0x759   :  { %v1562_v49 = vadd.f32 %v1558_v5, %v1550_v17  ;;  %v1582_v21 = vmul.f32 %v1574_v8, %v1560_v4  ;;  %v1588_v42 = vmul.f32 %v1587_v61, %v1560_v4  ;;  %v2784_v4 = vld [vmem:[#allocation5 + $0x10] sm:$0xff]  ;;  %v2785_v17 = vld [vmem:[#allocation5 + $0x18] sm:$0xff]  ;;  %v1732_v5 = vrot.slane %v3257_v32, %v3134_v58 }
 0x75a   :  { %v1581_v24 = vmul.f32 %v1570_v0, %v1563_v37  ;;  %v1599_v54 = vmul.f32 %v1595_v18, %v1583_v7  ;;  %v1591_v28 = vmul.f32 %v1587_v61, %v1563_v37 }
 0x75b   :  { %v1580_v62 = vmul.f32 %v1566_v41, %v1562_v49  ;;  %v1590_v33 = vmul.f32 %v1587_v61, %v1562_v49  ;;  %v1598_v38 = vmul.f32 %v1595_v18, %v1582_v21 }
 0x75c   :  { %v1597_v27 = vmul.f32 %v1595_v18, %v1581_v24  ;;  %v1603_v40 = vadd.f32 %v1599_v54, %v1591_v28 }
 0x75d   :  { %v1596_v31 = vmul.f32 %v1595_v18, %v1580_v62  ;;  %v1602_v50 = vadd.f32 %v1598_v38, %v1590_v33 }
 0x75e   :  { %v1621_v8 = vmul.f32 %v1610_v3, %v1603_v40  ;;  %v1601_v43 = vadd.f32 %v1597_v27, %v1589_v63  ;;  %v1631_v20 = vmul.f32 %v1627_v48, %v1603_v40 }
 0x75f   :  { %v1620_v1 = vmul.f32 %v1606_v6, %v1602_v50  ;;  %v1600_v51 = vadd.f32 %v1596_v31, %v1588_v42  ;;  %v1630_v29 = vmul.f32 %v1627_v48, %v1602_v50  ;;  %v1740_v6 = vrot.slane %v3254_v60, %v3134_v58 }
 0x760   :  { %v1637_v41 = vmul.f32 %v1635_v30, %v1621_v8  ;;  %v1623_v25 = vmul.f32 %v1618_v55, %v1601_v43  ;;  %v1629_v36 = vmul.f32 %v1627_v48, %v1601_v43  ;;  %v1837_v31 = vrot.slane %v3257_v32, %v3145_v39 }
 0x761   :  { %v1636_v9 = vmul.f32 %v1635_v30, %v1620_v1  ;;  %v1622_v57 = vmul.f32 %v1614_v26, %v1600_v51  ;;  %v1628_v10 = vmul.f32 %v1627_v48, %v1600_v51  ;;  %v1845_v50 = vrot.slane %v3254_v60, %v3145_v39 }
 0x762   :  { %v1639_v59 = vmul.f32 %v1635_v30, %v1623_v25  ;;  %v1641_v53 = vadd.f32 %v1637_v41, %v1629_v36 }
 0x763   :  { %v1638_v52 = vmul.f32 %v1635_v30, %v1622_v57  ;;  %v1640_v18 = vadd.f32 %v1636_v9, %v1628_v10  ;;  %v1942_v10 = vrot.slane %v3257_v32, %v3173_v34 }
 0x764   :  { %v1643_v56 = vadd.f32 %v1639_v59, %v1631_v20  ;;  %v1734_v7 = vmul.f32 %v1732_v5, %v1641_v53  ;;  %v1950_v20 = vrot.slane %v3254_v60, %v3173_v34 }
 0x765   :  { %v1642_v0 = vadd.f32 %v1638_v52, %v1630_v29  ;;  %v2693_v23 = vpack.c.bf16 %v1641_v53, %v1640_v18  ;;  %v1733_v21 = vmul.f32 %v1732_v5, %v1640_v18 }
 0x766   :  { %v1736_v62 = vmul.f32 %v1732_v5, %v1643_v56 }
 0x767   :  { %2694 = vmatprep.subr.bf16.mxu0 %v2693_v23  ;;  %v2697_v2 = vpack.c.bf16 %v1643_v56, %v1642_v0  ;;  %v1735_v27 = vmul.f32 %v1732_v5, %v1642_v0 }
 0x768   :  { %2696 = vmatpush3.bf16.msra.mxu0 %v2693_v23 }
 0x769   :  { %2698 = vmatprep.subr.bf16.mxu0 %v2697_v2 }
 0x76c   :  { %2700 = vmatpush3.bf16.msra.mxu0 %v2697_v2 }
 0x76f   :  { %2565 = vmatmul.mubr.msk.f32.vlgmr.msra.gmra.mrb[16].mxu0 %vm504_vm1, %v2783_v44 }
 0x770   :  { %2567 = vmatprep.mubr.msk.f32.mxu0 %vm504_vm1, %v2784_v4 }
 0x773   :  { %2568 = vmatmul.mubr.msk.f32.gmra.mrb[18].mxu0 %vm504_vm1, %v2785_v17 }
 0x774   :  { %2592 = vmatprep.mubr.msk.f32.mxu0 %vm504_vm1, %v3075_v16 }
 0x842   :  { %v2566_v37 = vpop.f32.mrb[16].mxu0 }
 0x843   :  { %v1742_v61 = vmul.f32 %v2566_v37, %v1740_v6  ;;  %v1710_v49 = vpop.f32.mrb[17].mxu0  ;;  %v2064_v37 = vld [vmem:[%s3356_s4] sm:$0xff] }
 0x844   :  { %v1741_v24 = vmul.f32 %v1740_v6, %v1710_v49 }
 0x845   :  { %v1746_v54 = vadd.f32 %v1742_v61, %v1734_v7  ;;  %v2047_v7 = vrot.slane %v3257_v32, %v3246_v35  ;;  %v2055_v61 = vrot.slane %v3254_v60, %v3246_v35  ;;  %v2065_v60 = vld [vmem:[%s3356_s4 + $0x8] sm:$0xff] }
 0x846   :  { %v1745_v3 = vadd.f32 %v1741_v24, %v1733_v21  ;;  %v2569_v28 = vpop.f32.mrb[18].mxu0 }
 0x847   :  { %v1744_v33 = vmul.f32 %v2569_v28, %v1740_v6  ;;  %v1720_v38 = vpop.f32.mrb[19].mxu0  ;;  %v1839_v42 = vmul.f32 %v1837_v31, %v1746_v54 }
 0x848   :  { %v1743_v16 = vmul.f32 %v1740_v6, %v1720_v38  ;;  %v2701_v30 = vpack.c.bf16 %v1746_v54, %v1745_v3 }
 0x849   :  { %v1748_v40 = vadd.f32 %v1744_v33, %v1736_v62 }
 0x84a   :  { %v1747_v63 = vadd.f32 %v1743_v16, %v1735_v27  ;;  %2702 = vmatprep.subr.bf16.mxu1 %v2701_v30 }
 0x84b   :  { %2704 = vmatpush3.bf16.msra.mxu1 %v2701_v30  ;;  %v1841_v41 = vmul.f32 %v1837_v31, %v1748_v40 }
 0x84c   :  { %v2705_v58 = vpack.c.bf16 %v1748_v40, %v1747_v63  ;;  %v1840_v36 = vmul.f32 %v1837_v31, %v1747_v63  ;;  %v2066_v63 = vld [vmem:[%s3356_s4 + $0x10] sm:$0xff] }
 0x84e   :  { %2706 = vmatprep.subr.bf16.mxu1 %v2705_v58 }
 0x84f   :  { %2708 = vmatpush3.bf16.msra.mxu1 %v2705_v58  ;;  %v2067_v58 = vld [vmem:[%s3356_s4 + $0x18] sm:$0xff]  ;;  %s2897_s4 = smov [#allocation8]  }
 0x850   :  { %s2259_s28 = sshll.u32 %s2897_s4, 4  ;;  %s2260_s28 = int_to_ptr.vmem [resolvable:$true] %s2259_s28 }
 0x851   :  { %s2852_s29 = scalar_lea.vmem %s2260_s28, 256  ;;  %p2857_p11 = scmp.lt.s32.totalorder %s2260_s28, %s2260_s28 }
 0x852   :  { %2579 = vmatmul.mubr.msk.f32.vlgmr.msra.gmra.mrb[16].mxu1 %vm504_vm1, %v3063_v13  ;;  %v1838_v13 = vmul.f32 %v1837_v31, %v1745_v3  ;;  %v2165_v31 = vld [vmem:[#allocation7] sm:$0xff]  ;;  %p2853_p10 = scmp.ne.s32.totalorder %s2260_s28, %s2852_s29  ;;  %p2858_p12 = scmp.lt.s32.totalorder %s2852_s29, %s2852_s29 }
 0x853   :  { %2581 = vmatprep.mubr.msk.f32.mxu1 %vm504_vm1, %v3065_v14 }
 0x854   :  { %p2859_p13 = por %p2858_p12, %p2857_p11 }
 0x856   :  { %2582 = vmatmul.mubr.msk.f32.gmra.mrb[18].mxu1 %vm504_vm1, %v3071_v15  ;;  %p2860_p0 = pnand %p2859_p13, %p2853_p10 }
 0x857   :  { %2606 = vmatprep.mubr.msk.f32.mxu1 %vm504_vm1, %v3098_v47 }
 0x925   :  { %v2580_v55 = vpop.f32.mrb[16].mxu1 }
 0x926   :  { %v1847_v48 = vmul.f32 %v2580_v55, %v1845_v50  ;;  %v1815_v8 = vpop.f32.mrb[17].mxu1 }
 0x927   :  { %v1846_v43 = vmul.f32 %v1845_v50, %v1815_v8 }
 0x928   :  { %v1851_v1 = vadd.f32 %v1847_v48, %v1839_v42 }
 0x929   :  { %v1850_v14 = vadd.f32 %v1846_v43, %v1838_v13  ;;  %v2583_v51 = vpop.f32.mrb[18].mxu1 }
 0x92a   :  { %v1849_v15 = vmul.f32 %v2583_v51, %v1845_v50  ;;  %v1825_v25 = vpop.f32.mrb[19].mxu1  ;;  %v1944_v53 = vmul.f32 %v1942_v10, %v1851_v1 }
 0x92b   :  { %v1848_v47 = vmul.f32 %v1845_v50, %v1825_v25  ;;  %v2709_v26 = vpack.c.bf16 %v1851_v1, %v1850_v14  ;;  %v1943_v18 = vmul.f32 %v1942_v10, %v1850_v14 }
 0x92c   :  { %v1853_v9 = vadd.f32 %v1849_v15, %v1841_v41  ;;  %v2166_v41 = vld [vmem:[#allocation7 + $0x8] sm:$0xff] }
 0x92d   :  { %v1852_v57 = vadd.f32 %v1848_v47, %v1840_v36  ;;  %2710 = vmatprep.subr.bf16.mxu0 %v2709_v26 }
 0x92e   :  { %2712 = vmatpush3.bf16.msra.mxu0 %v2709_v26  ;;  %v1946_v2 = vmul.f32 %v1942_v10, %v1853_v9 }
 0x92f   :  { %v2713_v39 = vpack.c.bf16 %v1853_v9, %v1852_v57  ;;  %v1945_v4 = vmul.f32 %v1942_v10, %v1852_v57 }
 0x931   :  { %2714 = vmatprep.subr.bf16.mxu0 %v2713_v39 }
 0x932   :  { %2716 = vmatpush3.bf16.msra.mxu0 %v2713_v39 }
 0x935   :  { %2593 = vmatmul.mubr.msk.f32.vlgmr.msra.gmra.mrb[20].mxu0 %vm504_vm1, %v3086_v45 }
 0x936   :  { %2595 = vmatprep.mubr.msk.f32.mxu0 %vm504_vm1, %v3088_v22 }
 0x939   :  { %2596 = vmatmul.mubr.msk.f32.gmra.mrb[22].mxu0 %vm504_vm1, %v3094_v46 }
 0x93a   :  { %2620 = vmatprep.mubr.msk.f32.mxu0 %vm504_vm1, %v2064_v37 }
 0xa08   :  { %v2594_v59 = vpop.f32.mrb[20].mxu0 }
 0xa09   :  { %v1952_v29 = vmul.f32 %v2594_v59, %v1950_v20  ;;  %v1920_v52 = vpop.f32.mrb[21].mxu0 }
 0xa0a   :  { %v1951_v56 = vmul.f32 %v1950_v20, %v1920_v52 }
 0xa0b   :  { %v1956_v0 = vadd.f32 %v1952_v29, %v1944_v53 }
 0xa0c   :  { %v1955_v45 = vadd.f32 %v1951_v56, %v1943_v18  ;;  %v2597_v23 = vpop.f32.mrb[22].mxu0 }
 0xa0d   :  { %v1954_v22 = vmul.f32 %v2597_v23, %v1950_v20  ;;  %v1930_v44 = vpop.f32.mrb[23].mxu0 }
 0xa0e   :  { %v1953_v46 = vmul.f32 %v1950_v20, %v1930_v44  ;;  %v2717_v17 = vpack.c.bf16 %v1956_v0, %v1955_v45 }
 0xa0f   :  { %v1958_v5 = vadd.f32 %v1954_v22, %v1946_v2 }
 0xa10   :  { %v1957_v6 = vadd.f32 %v1953_v46, %v1945_v4  ;;  %2718 = vmatprep.subr.bf16.mxu1 %v2717_v17 }
 0xa11   :  { %2720 = vmatpush3.bf16.msra.mxu1 %v2717_v17  ;;  %v2051_v62 = vmul.f32 %v2047_v7, %v1958_v5 }
 0xa12   :  { %v2721_v34 = vpack.c.bf16 %v1958_v5, %v1957_v6  ;;  %v2050_v27 = vmul.f32 %v2047_v7, %v1957_v6 }
 0xa14   :  { %2722 = vmatprep.subr.bf16.mxu1 %v2721_v34 }
 0xa15   :  { %2724 = vmatpush3.bf16.msra.mxu1 %v2721_v34 }
 0xa18   :  { %2607 = vmatmul.mubr.msk.f32.vlgmr.msra.gmra.mrb[20].mxu1 %vm504_vm1, %v3109_v11  ;;  %v2049_v11 = vmul.f32 %v2047_v7, %v1956_v0 }
 0xa19   :  { %2609 = vmatprep.mubr.msk.f32.mxu1 %vm504_vm1, %v3111_v12  ;;  %v2048_v12 = vmul.f32 %v2047_v7, %v1955_v45 }
 0xa1c   :  { %2610 = vmatmul.mubr.msk.f32.gmra.mrb[22].mxu1 %vm504_vm1, %v3117_v19 }
 0xa1d   :  { %2634 = vmatprep.mubr.msk.f32.mxu1 %vm504_vm1, %v2165_v31 }
 0xaeb   :  { %v2608_v49 = vpop.f32.mrb[20].mxu1 }
 0xaec   :  { %v2057_v21 = vmul.f32 %v2608_v49, %v2055_v61  ;;  %v2025_v24 = vpop.f32.mrb[21].mxu1 }
 0xaed   :  { %v2056_v54 = vmul.f32 %v2055_v61, %v2025_v24 }
 0xaee   :  { %v2061_v3 = vadd.f32 %v2057_v21, %v2049_v11 }
 0xaef   :  { %v2060_v19 = vadd.f32 %v2056_v54, %v2048_v12  ;;  %v2611_v28 = vpop.f32.mrb[22].mxu1 }
 0xaf0   :  { %v2059_v33 = vmul.f32 %v2611_v28, %v2055_v61  ;;  %v2035_v38 = vpop.f32.mrb[23].mxu1 }
 0xaf1   :  { %v2058_v16 = vmul.f32 %v2055_v61, %v2035_v38  ;;  %v2725_v30 = vpack.c.bf16 %v2061_v3, %v2060_v19 }
 0xaf2   :  { %v2063_v40 = vadd.f32 %v2059_v33, %v2051_v62 }
 0xaf3   :  { %v2062_v32 = vadd.f32 %v2058_v16, %v2050_v27  ;;  %2726 = vmatprep.subr.bf16.mxu0 %v2725_v30 }
 0xaf4   :  { %2728 = vmatpush3.bf16.msra.mxu0 %v2725_v30 }
 0xaf5   :  { %v2729_v35 = vpack.c.bf16 %v2063_v40, %v2062_v32 }
 0xaf7   :  { %2730 = vmatprep.subr.bf16.mxu0 %v2729_v35 }
 0xaf8   :  { %2732 = vmatpush3.bf16.msra.mxu0 %v2729_v35 }
 0xafb   :  { %2621 = vmatmul.mubr.msk.f32.vlgmr.msra.gmra.mrb[24].mxu0 %vm504_vm1, %v2065_v60 }
 0xafc   :  { %2623 = vmatprep.mubr.msk.f32.mxu0 %vm504_vm1, %v2066_v63 }
 0xaff   :  { %2624 = vmatmul.mubr.msk.f32.gmra.mrb[26].mxu0 %vm504_vm1, %v2067_v58 }
 0xbce   :  { %v2622_v50 = vpop.f32.mrb[24].mxu0 }
 0xbcf   :  { %v2168_v55 = vmul.f32 %v2622_v50, %v2622_v50  ;;  %v2146_v42 = vpop.f32.mrb[25].mxu0 }
 0xbd0   :  { %v2167_v48 = vmul.f32 %v2146_v42, %v2146_v42 }
 0xbd2   :  { %v2733_v8 = vpack.c.bf16 %v2168_v55, %v2167_v48  ;;  %v2625_v13 = vpop.f32.mrb[26].mxu0 }
 0xbd3   :  { %v2170_v43 = vmul.f32 %v2625_v13, %v2625_v13  ;;  %v2156_v1 = vpop.f32.mrb[27].mxu0 }
 0xbd4   :  { %v2169_v14 = vmul.f32 %v2156_v1, %v2156_v1  ;;  %2734 = vmatprep.subr.bf16.mxu1 %v2733_v8 }
 0xbd5   :  { %2736 = vmatpush3.bf16.msra.mxu1 %v2733_v8 }
 0xbd6   :  { %v2737_v51 = vpack.c.bf16 %v2170_v43, %v2169_v14 }
 0xbd8   :  { %2738 = vmatprep.subr.bf16.mxu1 %v2737_v51 }
 0xbd9   :  { %2740 = vmatpush3.bf16.msra.mxu1 %v2737_v51 }
 0xbdc   :  { %2635 = vmatmul.mubr.msk.f32.vlgmr.msra.gmra.mrb[24].mxu1 %vm504_vm1, %v2166_v41 }
 0xcaf   :  { %v2636_v15 = vpop.f32.mrb[24].mxu1 }
 0xcb0   :  { %2253 = vst [vmem:[#allocation8 + $0x8] sm:$0xff] %v2636_v15  ;;  %v2243_v25 = vpop.f32.mrb[25].mxu1 }
 0xcb1   :  { %2252 = vst [vmem:[#allocation8] sm:$0xff] %v2243_v25 }
 0xcb2   :  { %2863 = shalt.err (!%p2860_p0)
}
 0xcb3   :  { %s2864_s8 = scalar_lea.hbm %s3358_s6, 256 }
 0xcb4   :  { %p2865_p1 = scmp.ne.s32.totalorder %s3358_s6, %s2864_s8  ;;  %p2868_p2 = scmp.lt.u32.totalorder %s2864_s8, %s3358_s6 }
 0xcb6   :  { %p2870_p3 = pnand %p2868_p2, %p2865_p1 }
 0xcb8   :  { %2873 = shalt.err (!%p2870_p3)
}
 0xcb9   :  { %2265 = dma.vmem_to_hbm [thread:$0]  %s2260_s28, 256, %s3358_s6, [#allocation4], %s2882_s9, %s2882_s9, %s2883_s10  }
 0xcba   :  { %2878 = dma.done.wait [#allocation4], 256  }
 0xcbb   :  { %2879 = vsyncadd [#allocation4], 4294967040 }
 0xcbc   :  { %2269 = vsyncpa [#allocation3], 1 }
 0xcbd   :  { %2270 = vsyncpa [#allocation6], 1 }
 0xcbe   :  { %2271 = vsyncpa [#allocation4], 1 }

</bundles_post_ra>
